<compile_context>
chip_gen: v5e
topology: v5e:2x2
jax: 0.10.0
libtpu: 0.0.40
codegen_flags: <defaults>
</compile_context>

<pallas_src>
import jax
import jax.numpy as jnp
from jax.experimental import pallas as pl
from jax.experimental.pallas import tpu as pltpu


_LAYER_DIMS = ((2, 100), (100, 100), (100, 30), (30, 2))  # (fan_in, fan_out)


def _mlp_kernel(x_ref, w1_ref, b1_ref, w2_ref, b2_ref, w3_ref, b3_ref,
                w4_ref, b4_ref, o_ref):
    """Fused forward pass for one batch tile, batch-in-lanes layout.

    x_ref:  (2, B)          input tile, batch on the lane axis
    wk_ref: (out_k, in_k)   PyTorch nn.Linear layout
    bk_ref: (out_k, 1)
    o_ref:  (2, B)
    """
    x = x_ref[...].astype(jnp.float32)            # (2, B)

    # Layer 1: K = 2 contraction on the VPU (two broadcast FMAs) instead of a
    # ~98%-padded MXU pass.
    w1 = w1_ref[...].astype(jnp.float32)          # (100, 2)
    a1 = (w1[:, 0:1] * x[0:1, :]
          + w1[:, 1:2] * x[1:2, :]
          + b1_ref[...])                          # (100, B) f32
    a1 = jnp.maximum(a1, 0.0)

    # Layers 2-3 on the MXU as W @ act with f32 accumulation. Activations are
    # cast to the weight dtype (bf16 by default, f32 optional) so the wrapper
    # controls MXU input precision; bias-add / ReLU stay f32.
    w2 = w2_ref[...]                              # (100, 100)
    a2 = jnp.dot(w2, a1.astype(w2.dtype),
                 preferred_element_type=jnp.float32) + b2_ref[...]
    a2 = jnp.maximum(a2, 0.0)

    w3 = w3_ref[...]                              # (30, 100)
    a3 = jnp.dot(w3, a2.astype(w3.dtype),
                 preferred_element_type=jnp.float32) + b3_ref[...]
    a3 = jnp.maximum(a3, 0.0)                     # (30, B) f32

    # Layer 4 (30 -> 2) on the VPU/XLU: broadcast multiply + sublane reduce per
    # output row. Avoids a >99%-padded MXU pass and its result-FIFO drain.
    w4 = w4_ref[...].astype(jnp.float32)          # (2, 30)
    row0 = jnp.sum(w4[0:1, :].T * a3, axis=0, keepdims=True)   # (1, B)
    row1 = jnp.sum(w4[1:2, :].T * a3, axis=0, keepdims=True)   # (1, B)
    a4 = jnp.concatenate([row0, row1], axis=0) + b4_ref[...]   # (2, B)

    o_ref[...] = a4.astype(o_ref.dtype)


def _round_up(v, m):
    return -(-v // m) * m


def _choose_tiling(n, *, max_block=4096, align=256, split_threshold=2048):
    """Pick (block_b, n_pad).

    - Pads the batch only to `align`, so small batches avoid several-x wasted
      columns (v2 padded all the way to block_b).
    - Caps the tile at `max_block` so VMEM stays bounded and the grid actually
      software-pipelines for big batches.
    - Once the batch is large enough, prefers an even number of >= 2 grid steps
      so v7x's two TensorCores both get work on the "parallel" axis.
    """
    n_pad = _round_up(max(n, 1), align)
    num_steps = -(-n_pad // max_block)
    if num_steps == 1 and n_pad >= split_threshold:
        num_steps = 2
    if num_steps > 1 and num_steps % 2:
        num_steps += 1
    block_b = _round_up(-(-n_pad // num_steps), align)
    return block_b, block_b * num_steps


def _padded_tile_bytes(shape, itemsize):
    r = shape[-2] if len(shape) >= 2 else 1
    c = shape[-1]
    return _round_up(r, 8) * _round_up(c, 128) * itemsize


def _vmem_limit_bytes(block_b, params):
    """VMEM budget from the actual tile sizes (+headroom), capped for v7x."""
    io = 2 * 2 * _padded_tile_bytes((2, block_b), 4)      # x/out tiles, 2x buffers
    wgt = 2 * sum(_padded_tile_bytes(p.shape, p.dtype.itemsize) for p in params)
    act = sum(_padded_tile_bytes((fo, block_b), 4) for _, fo in _LAYER_DIMS)
    est = io + wgt + act
    # 4x headroom for compiler scratch / spills, clamp to v7x's 64 MiB VMEM.
    return int(min(max(4 * est, 16 * 1024 * 1024), 64 * 1024 * 1024))


def transform_network_forward(x, params, *, block_b=None,
                              mxu_dtype=jnp.bfloat16):
    """y = TransformNetwork(x), x: (N, 2) -> y: (N, 2).

    Tiles the batch over a 1-D "parallel" grid with a lane-aligned tile.
    block_b=None picks the tile adaptively (see _choose_tiling); an explicit
    block_b (multiple of 128) pads the batch to a multiple of it. Padded
    columns are sliced off the output, so any N works. Layers 2-3 run on the
    MXU with `mxu_dtype` weights/activations and f32 accumulation.
    """
    n, d_in = x.shape
    assert d_in == 2, "TransformNetwork expects 2 input features"
    w1, b1, w2, b2, w3, b3, w4, b4 = params
    # bf16-by-default MXU path: only the layers that actually hit the MXU.
    w2 = w2.astype(mxu_dtype)
    w3 = w3.astype(mxu_dtype)
    d_out = w4.shape[0]

    if block_b is None:
        block_b, n_pad = _choose_tiling(n)
    else:
        assert block_b % 128 == 0, "batch tile must be a multiple of 128"
        n_pad = _round_up(n, block_b)

    # Batch-in-lanes layout: (2, N_pad). Cheap XLA transpose/pad of tiny data.
    x_t = x.T
    if n_pad != n:
        x_t = jnp.pad(x_t, ((0, 0), (0, n_pad - n)))
    grid = (n_pad // block_b,)

    def resident(shape):
        # Full-array block with a constant index map -> stays resident in VMEM
        # across grid steps (no re-DMA per step).
        return pl.BlockSpec(shape, lambda i: (0, 0))

    in_specs = [
        pl.BlockSpec((d_in, block_b), lambda i: (0, i)),
        resident(w1.shape), resident(b1.shape),
        resident(w2.shape), resident(b2.shape),
        resident(w3.shape), resident(b3.shape),
        resident(w4.shape), resident(b4.shape),
    ]
    out_specs = pl.BlockSpec((d_out, block_b), lambda i: (0, i))

    params_cast = (w1, b1, w2, b2, w3, b3, w4, b4)
    flops = 2 * n_pad * sum(fi * fo for fi, fo in _LAYER_DIMS)
    param_bytes = sum(p.size * p.dtype.itemsize for p in params_cast)
    bytes_accessed = (n_pad * d_in + n_pad * d_out) * 4 + param_bytes

    out_t = pl.pallas_call(
        _mlp_kernel,
        out_shape=jax.ShapeDtypeStruct((d_out, n_pad), x.dtype),
        grid_spec=pltpu.PrefetchScalarGridSpec(
            num_scalar_prefetch=0,
            grid=grid,
            in_specs=in_specs,
            out_specs=out_specs,
        ),
        compiler_params=pltpu.CompilerParams(
            dimension_semantics=("parallel",),
            vmem_limit_bytes=_vmem_limit_bytes(block_b, params_cast),
        ),
        cost_estimate=pl.CostEstimate(
            flops=flops, transcendentals=0, bytes_accessed=bytes_accessed),
    )(x_t, *params_cast)

    return out_t[:, :n].T


def init_params(key):
    """PyTorch nn.Linear default init: U(-1/sqrt(fan_in), 1/sqrt(fan_in)).

    Weights in PyTorch layout (out_features, in_features); biases (out, 1).
    """
    params = []
    for fan_in, fan_out in _LAYER_DIMS:
        key, kw, kb = jax.random.split(key, 3)
        bound = 1.0 / jnp.sqrt(jnp.float32(fan_in))
        w = jax.random.uniform(kw, (fan_out, fan_in), jnp.float32,
                               minval=-bound, maxval=bound)
        b = jax.random.uniform(kb, (fan_out, 1), jnp.float32,
                               minval=-bound, maxval=bound)
        params += [w, b]
    return tuple(params)


def reference_forward(x, params):
    w1, b1, w2, b2, w3, b3, w4, b4 = params
    a1 = jax.nn.relu(x @ w1.T + b1[:, 0])
    a2 = jax.nn.relu(a1 @ w2.T + b2[:, 0])
    a3 = jax.nn.relu(a2 @ w3.T + b3[:, 0])
    return a3 @ w4.T + b4[:, 0]


if __name__ == "__main__":
    key = jax.random.PRNGKey(0)
    key, kx = jax.random.split(key)

    batch = 300          # deliberately not lane-aligned: exercises batch padding
    x = jax.random.normal(kx, (batch, 2), jnp.float32)
    params = init_params(key)
    ref = reference_forward(x, params)

    # Default path: adaptive tile, bf16 MXU weights, f32 accumulation.
    out = jax.block_until_ready(transform_network_forward(x, params))
    assert out.shape == (batch, 2)
    assert jnp.allclose(out, ref, atol=5e-2, rtol=5e-2), "bf16 mismatch vs reference"

    # All-f32 path: tight check against the reference.
    out_f32 = jax.block_until_ready(
        transform_network_forward(x, params, mxu_dtype=jnp.float32))
    assert out_f32.shape == (batch, 2)
    assert jnp.allclose(out_f32, ref, atol=1e-5, rtol=1e-5), "f32 mismatch vs reference"

    # Multi-step grid (3 steps of 128): exercises pipelining + output slicing.
    out_ms = jax.block_until_ready(
        transform_network_forward(x, params, block_b=128, mxu_dtype=jnp.float32))
    assert jnp.allclose(out_ms, ref, atol=1e-5, rtol=1e-5), "multi-step mismatch"

    print("KERNEL_OK")
</pallas_src>

<mosaic_0001>
module attributes {stable_mosaic.version = 11 : i64} {
  func.func @_mlp_kernel(%arg0: i32, %arg1: memref<2x512xf32, #tpu.memory_space<vmem>>, %arg2: memref<100x2xf32, #tpu.memory_space<vmem>>, %arg3: memref<100x1xf32, #tpu.memory_space<vmem>>, %arg4: memref<100x100xbf16, #tpu.memory_space<vmem>>, %arg5: memref<100x1xf32, #tpu.memory_space<vmem>>, %arg6: memref<30x100xbf16, #tpu.memory_space<vmem>>, %arg7: memref<30x1xf32, #tpu.memory_space<vmem>>, %arg8: memref<2x30xf32, #tpu.memory_space<vmem>>, %arg9: memref<2x1xf32, #tpu.memory_space<vmem>>, %arg10: memref<2x512xf32, #tpu.memory_space<vmem>>) attributes {dimension_semantics = [#tpu.dimension_semantics<parallel>], iteration_bounds = array<i64: 1>, scalar_prefetch = 0 : i64, scratch_operands = 0 : i64, tpu.core_type = #tpu.core_type<tc>, window_params = [{transform_indices = @transform_0, window_bounds = array<i64: 2, 512>}, {pipeline_mode = #tpu.pipeline_mode<synchronous>, transform_indices = @transform_1, window_bounds = array<i64: 100, 2>}, {pipeline_mode = #tpu.pipeline_mode<synchronous>, transform_indices = @transform_2, window_bounds = array<i64: 100, 1>}, {pipeline_mode = #tpu.pipeline_mode<synchronous>, transform_indices = @transform_3, window_bounds = array<i64: 100, 100>}, {pipeline_mode = #tpu.pipeline_mode<synchronous>, transform_indices = @transform_4, window_bounds = array<i64: 100, 1>}, {pipeline_mode = #tpu.pipeline_mode<synchronous>, transform_indices = @transform_5, window_bounds = array<i64: 30, 100>}, {pipeline_mode = #tpu.pipeline_mode<synchronous>, transform_indices = @transform_6, window_bounds = array<i64: 30, 1>}, {pipeline_mode = #tpu.pipeline_mode<synchronous>, transform_indices = @transform_7, window_bounds = array<i64: 2, 30>}, {pipeline_mode = #tpu.pipeline_mode<synchronous>, transform_indices = @transform_8, window_bounds = array<i64: 2, 1>}, {transform_indices = @transform_9, window_bounds = array<i64: 2, 512>}]} {
    %c0 = arith.constant 0 : index
    %c0_0 = arith.constant 0 : index
    %0 = vector.load %arg1[%c0, %c0_0] : memref<2x512xf32, #tpu.memory_space<vmem>>, vector<2x512xf32>
    %c0_1 = arith.constant 0 : index
    %c0_2 = arith.constant 0 : index
    %1 = vector.load %arg2[%c0_1, %c0_2] : memref<100x2xf32, #tpu.memory_space<vmem>>, vector<100x2xf32>
    %2 = vector.extract_strided_slice %1 {offsets = [0, 0], sizes = [100, 1], strides = [1, 1]} : vector<100x2xf32> to vector<100x1xf32>
    %3 = vector.extract_strided_slice %0 {offsets = [0, 0], sizes = [1, 512], strides = [1, 1]} : vector<2x512xf32> to vector<1x512xf32>
    %4 = vector.broadcast %2 : vector<100x1xf32> to vector<100x512xf32>
    %5 = vector.broadcast %3 : vector<1x512xf32> to vector<100x512xf32>
    %6 = arith.mulf %4, %5 : vector<100x512xf32>
    %7 = vector.extract_strided_slice %1 {offsets = [0, 1], sizes = [100, 1], strides = [1, 1]} : vector<100x2xf32> to vector<100x1xf32>
    %8 = vector.extract_strided_slice %0 {offsets = [1, 0], sizes = [1, 512], strides = [1, 1]} : vector<2x512xf32> to vector<1x512xf32>
    %9 = vector.broadcast %7 : vector<100x1xf32> to vector<100x512xf32>
    %10 = vector.broadcast %8 : vector<1x512xf32> to vector<100x512xf32>
    %11 = arith.mulf %9, %10 : vector<100x512xf32>
    %12 = arith.addf %6, %11 : vector<100x512xf32>
    %c0_3 = arith.constant 0 : index
    %c0_4 = arith.constant 0 : index
    %13 = vector.load %arg3[%c0_3, %c0_4] : memref<100x1xf32, #tpu.memory_space<vmem>>, vector<100x1xf32>
    %14 = vector.broadcast %13 : vector<100x1xf32> to vector<100x512xf32>
    %15 = arith.addf %12, %14 : vector<100x512xf32>
    %cst = arith.constant 0.000000e+00 : f32
    %16 = vector.broadcast %cst : f32 to vector<100x512xf32>
    %17 = arith.maximumf %15, %16 : vector<100x512xf32>
    %c0_5 = arith.constant 0 : index
    %c0_6 = arith.constant 0 : index
    %18 = vector.load %arg4[%c0_5, %c0_6] : memref<100x100xbf16, #tpu.memory_space<vmem>>, vector<100x100xbf16>
    %19 = arith.truncf %17 : vector<100x512xf32> to vector<100x512xbf16>
    %cst_7 = arith.constant dense<0.000000e+00> : vector<100x512xf32>
    %20 = tpu.matmul %18, %19, %cst_7 {dimension_numbers = #tpu.dot_dimension_numbers<[1], [0], [0], [1], [0, 0, 1, 1], [], []>} : vector<100x100xbf16>, vector<100x512xbf16>, vector<100x512xf32> -> vector<100x512xf32>
    %c0_8 = arith.constant 0 : index
    %c0_9 = arith.constant 0 : index
    %21 = vector.load %arg5[%c0_8, %c0_9] : memref<100x1xf32, #tpu.memory_space<vmem>>, vector<100x1xf32>
    %22 = vector.broadcast %21 : vector<100x1xf32> to vector<100x512xf32>
    %23 = arith.addf %20, %22 : vector<100x512xf32>
    %cst_10 = arith.constant 0.000000e+00 : f32
    %24 = vector.broadcast %cst_10 : f32 to vector<100x512xf32>
    %25 = arith.maximumf %23, %24 : vector<100x512xf32>
    %c0_11 = arith.constant 0 : index
    %c0_12 = arith.constant 0 : index
    %26 = vector.load %arg6[%c0_11, %c0_12] : memref<30x100xbf16, #tpu.memory_space<vmem>>, vector<30x100xbf16>
    %27 = arith.truncf %25 : vector<100x512xf32> to vector<100x512xbf16>
    %cst_13 = arith.constant dense<0.000000e+00> : vector<30x512xf32>
    %28 = tpu.matmul %26, %27, %cst_13 {dimension_numbers = #tpu.dot_dimension_numbers<[1], [0], [0], [1], [0, 0, 1, 1], [], []>} : vector<30x100xbf16>, vector<100x512xbf16>, vector<30x512xf32> -> vector<30x512xf32>
    %c0_14 = arith.constant 0 : index
    %c0_15 = arith.constant 0 : index
    %29 = vector.load %arg7[%c0_14, %c0_15] : memref<30x1xf32, #tpu.memory_space<vmem>>, vector<30x1xf32>
    %30 = vector.broadcast %29 : vector<30x1xf32> to vector<30x512xf32>
    %31 = arith.addf %28, %30 : vector<30x512xf32>
    %cst_16 = arith.constant 0.000000e+00 : f32
    %32 = vector.broadcast %cst_16 : f32 to vector<30x512xf32>
    %33 = arith.maximumf %31, %32 : vector<30x512xf32>
    %c0_17 = arith.constant 0 : index
    %c0_18 = arith.constant 0 : index
    %34 = vector.load %arg8[%c0_17, %c0_18] : memref<2x30xf32, #tpu.memory_space<vmem>>, vector<2x30xf32>
    %35 = vector.extract_strided_slice %34 {offsets = [0, 0], sizes = [1, 30], strides = [1, 1]} : vector<2x30xf32> to vector<1x30xf32>
    %36 = tpu.transpose %35, [1, 0] : vector<1x30xf32> -> vector<30x1xf32>
    %37 = vector.broadcast %36 : vector<30x1xf32> to vector<30x512xf32>
    %38 = arith.mulf %37, %33 : vector<30x512xf32>
    %cst_19 = arith.constant dense<0.000000e+00> : vector<512xf32>
    %39 = vector.multi_reduction <add>, %38, %cst_19 [0] : vector<30x512xf32> to vector<512xf32>
    %40 = vector.shape_cast %39 : vector<512xf32> to vector<1x512xf32>
    %41 = vector.extract_strided_slice %34 {offsets = [1, 0], sizes = [1, 30], strides = [1, 1]} : vector<2x30xf32> to vector<1x30xf32>
    %42 = tpu.transpose %41, [1, 0] : vector<1x30xf32> -> vector<30x1xf32>
    %43 = vector.broadcast %42 : vector<30x1xf32> to vector<30x512xf32>
    %44 = arith.mulf %43, %33 : vector<30x512xf32>
    %cst_20 = arith.constant dense<0.000000e+00> : vector<512xf32>
    %45 = vector.multi_reduction <add>, %44, %cst_20 [0] : vector<30x512xf32> to vector<512xf32>
    %46 = vector.shape_cast %45 : vector<512xf32> to vector<1x512xf32>
    %47 = tpu.concatenate %40, %46 in 0 : vector<1x512xf32>, vector<1x512xf32> -> vector<2x512xf32>
    %c0_21 = arith.constant 0 : index
    %c0_22 = arith.constant 0 : index
    %48 = vector.load %arg9[%c0_21, %c0_22] : memref<2x1xf32, #tpu.memory_space<vmem>>, vector<2x1xf32>
    %49 = vector.broadcast %48 : vector<2x1xf32> to vector<2x512xf32>
    %50 = arith.addf %47, %49 : vector<2x512xf32>
    %c0_23 = arith.constant 0 : index
    %c0_24 = arith.constant 0 : index
    %51 = vector.load %arg10[%c0_23, %c0_24] : memref<2x512xf32, #tpu.memory_space<vmem>>, vector<2x512xf32>
    tpu.vector_store %arg10[%c0_23, %c0_24], %50 {strides = array<i32>} : memref<2x512xf32, #tpu.memory_space<vmem>>, vector<2x512xf32>,
    return
  }
  func.func @transform_0(%arg0: i32) -> (i32, i32) {
    %c0_i32 = arith.constant 0 : i32
    %c0_i32_0 = arith.constant 0 : i32
    return %c0_i32, %arg0 : i32, i32
  }
  func.func @transform_1(%arg0: i32) -> (i32, i32) {
    %c0_i32 = arith.constant 0 : i32
    %c0_i32_0 = arith.constant 0 : i32
    %c0_i32_1 = arith.constant 0 : i32
    return %c0_i32, %c0_i32_0 : i32, i32
  }
  func.func @transform_2(%arg0: i32) -> (i32, i32) {
    %c0_i32 = arith.constant 0 : i32
    %c0_i32_0 = arith.constant 0 : i32
    %c0_i32_1 = arith.constant 0 : i32
    return %c0_i32, %c0_i32_0 : i32, i32
  }
  func.func @transform_3(%arg0: i32) -> (i32, i32) {
    %c0_i32 = arith.constant 0 : i32
    %c0_i32_0 = arith.constant 0 : i32
    %c0_i32_1 = arith.constant 0 : i32
    return %c0_i32, %c0_i32_0 : i32, i32
  }
  func.func @transform_4(%arg0: i32) -> (i32, i32) {
    %c0_i32 = arith.constant 0 : i32
    %c0_i32_0 = arith.constant 0 : i32
    %c0_i32_1 = arith.constant 0 : i32
    return %c0_i32, %c0_i32_0 : i32, i32
  }
  func.func @transform_5(%arg0: i32) -> (i32, i32) {
    %c0_i32 = arith.constant 0 : i32
    %c0_i32_0 = arith.constant 0 : i32
    %c0_i32_1 = arith.constant 0 : i32
    return %c0_i32, %c0_i32_0 : i32, i32
  }
  func.func @transform_6(%arg0: i32) -> (i32, i32) {
    %c0_i32 = arith.constant 0 : i32
    %c0_i32_0 = arith.constant 0 : i32
    %c0_i32_1 = arith.constant 0 : i32
    return %c0_i32, %c0_i32_0 : i32, i32
  }
  func.func @transform_7(%arg0: i32) -> (i32, i32) {
    %c0_i32 = arith.constant 0 : i32
    %c0_i32_0 = arith.constant 0 : i32
    %c0_i32_1 = arith.constant 0 : i32
    return %c0_i32, %c0_i32_0 : i32, i32
  }
  func.func @transform_8(%arg0: i32) -> (i32, i32) {
    %c0_i32 = arith.constant 0 : i32
    %c0_i32_0 = arith.constant 0 : i32
    %c0_i32_1 = arith.constant 0 : i32
    return %c0_i32, %c0_i32_0 : i32, i32
  }
  func.func @transform_9(%arg0: i32) -> (i32, i32) {
    %c0_i32 = arith.constant 0 : i32
    %c0_i32_0 = arith.constant 0 : i32
    return %c0_i32, %arg0 : i32, i32
  }
}

</mosaic_0001>

<bundles_post_ra>
// kernel: tpu_custom_call.1
= control target key start
LH: loop header
LB: loop body
LE: loop exit
PB: predicated region body
PF: predicated region fallthrough
CT: control target
= control target key end

     0   :  { %v1509_v2 = vmov 1   ;;  %v1510_v3 = vmov 0   ;;  %s2245_s0 = inlined_call_operand.vmem [shape: f32[2,512], index: 0, kind: input, shape index: {}]   ;;  %s2246_s1 = inlined_call_operand.vmem [shape: f32[100,2], index: 1, kind: input, shape index: {}]   ;;  %s2247_s2 = inlined_call_operand.vmem [shape: f32[100,1], index: 2, kind: input, shape index: {}]   ;;  %s2248_s3 = inlined_call_operand.vmem [shape: bf16[100,100], index: 3, kind: input, shape index: {}]   ;;  %s2249_s4 = inlined_call_operand.vmem [shape: f32[100,1], index: 4, kind: input, shape index: {}]   ;;  %s2250_s5 = inlined_call_operand.vmem [shape: bf16[30,100], index: 5, kind: input, shape index: {}]   ;;  %s2251_s6 = inlined_call_operand.vmem [shape: f32[30,1], index: 6, kind: input, shape index: {}]   ;;  %s2252_s7 = inlined_call_operand.vmem [shape: f32[2,30], index: 7, kind: input, shape index: {}]   ;;  %s2253_s8 = inlined_call_operand.vmem [shape: f32[2,1], index: 8, kind: input, shape index: {}]   ;;  %s2254_s9 = inlined_call_operand.hbm [shape: f32[2,512], index: 9, kind: output, shape index: {}]  }
   0x1   :  { %v358_v0 = vld [vmem:[%s2247_s2 + $0x60] sm:$0xf]  ;;  %1461 = vset.pattern.permute.xlu0 %v1509_v2  ;;  %1463 = vset.pattern.permute.xlu2 %v1510_v3  ;;  %v46_v4 = vld [vmem:[%s2246_s1 + $0x58] sm:$0xff] }
   0x2   :  { %v47_v1 = vld [vmem:[%s2246_s1 + $0x60] sm:$0xf]  ;;  %1462 = vset.pattern.permute.xlu1 %v1510_v3  ;;  %105 = vperm.xlu2 %1463, %v46_v4  }
   0x3   :  { %227 = vperm.xlu0 %1461, %v47_v1   ;;  %421 = vperm.xlu1 %1462, %v358_v0  }
   0x4   :  { %14 = vsyncpa [#allocation3], 0  ;;  %v42_v5 = vld [vmem:[%s2246_s1 + $0x38] sm:$0xff]  ;;  %v45_v6 = vld [vmem:[%s2246_s1 + $0x50] sm:$0xff]  ;;  %vm702_vm0 = vcmask 1041408   ;;  %vm680_vm1 = vcmask 818176  }
   0x5   :  { %v39_v7 = vld [vmem:[%s2246_s1 + $0x20] sm:$0xff]  ;;  %v44_v9 = vld [vmem:[%s2246_s1 + $0x48] sm:$0xff]  ;;  %v356_v10 = vld [vmem:[%s2247_s2 + $0x50] sm:$0xff]  ;;  %vm1186_vm2 = vcmask 1045504   ;;  %vm1336_vm3 = vcmask 1040384   ;;  %vm1359_vm4 = vcmask 1045508  }
   0x6   :  { %v43_v8 = vld [vmem:[%s2246_s1 + $0x40] sm:$0xff]  ;;  %v357_v11 = vld [vmem:[%s2247_s2 + $0x58] sm:$0xff]  ;;  %v41_v12 = vld [vmem:[%s2246_s1 + $0x30] sm:$0xff]  ;;  %s1372_s26 = sshll.u32 %s2254_s9, 4  ;;  %vm1361_vm5 = vcmask 1043456   ;;  %s1373_s26 = int_to_ptr.hbm [resolvable:$true] %s1372_s26 }
   0x7   :  { %v353_v13 = vld [vmem:[%s2247_s2 + $0x38] sm:$0xff]  ;;  %v354_v14 = vld [vmem:[%s2247_s2 + $0x40] sm:$0xff]  ;;  %v355_v15 = vld [vmem:[%s2247_s2 + $0x48] sm:$0xff] }
   0x8   :  { %v350_v16 = vld [vmem:[%s2247_s2 + $0x20] sm:$0xff]  ;;  %v40_v17 = vld [vmem:[%s2246_s1 + $0x28] sm:$0xff]  ;;  %v352_v19 = vld [vmem:[%s2247_s2 + $0x30] sm:$0xff] }
   0x9   :  { %v36_v18 = vld [vmem:[%s2246_s1 + $0x8] sm:$0xff]  ;;  %v348_v20 = vld [vmem:[%s2247_s2 + $0x10] sm:$0xff]  ;;  %v38_v22 = vld [vmem:[%s2246_s1 + $0x18] sm:$0xff] }
   0xa   :  { %1464 = vset.pattern.permute.xlu2 %v1509_v2  ;;  %v37_v21 = vld [vmem:[%s2246_s1 + $0x10] sm:$0xff]  ;;  %v347_v23 = vld [vmem:[%s2247_s2 + $0x8] sm:$0xff]  ;;  %v580_v24 = vld [vmem:[%s2249_s4 + $0x58] sm:$0xff] }
   0xb   :  { %207 = vperm.xlu0 %1461, %v42_v5   ;;  %100 = vperm.xlu1 %1462, %v45_v6   ;;  %v351_v26 = vld [vmem:[%s2247_s2 + $0x28] sm:$0xff]  ;;  %v35_v27 = vld [vmem:[%s2246_s1] sm:$0xff]  ;;  %v575_v28 = vld [vmem:[%s2249_s4 + $0x30] sm:$0xff] }
   0xc   :  { %219 = vperm.xlu2 %1464, %v45_v6   ;;  %v574_v30 = vld [vmem:[%s2249_s4 + $0x28] sm:$0xff]  ;;  %v349_v32 = vld [vmem:[%s2247_s2 + $0x18] sm:$0xff]  ;;  %v569_v33 = vld [vmem:[%s2249_s4] sm:$0xff] }
   0xd   :  { %v346_v34 = vld [vmem:[%s2247_s2] sm:$0xff]  ;;  %v579_v39 = vld [vmem:[%s2249_s4 + $0x50] sm:$0xff]  ;;  %v578_v53 = vld [vmem:[%s2249_s4 + $0x48] sm:$0xff] }
   0xe   :  { %v581_v37 = vld [vmem:[%s2249_s4 + $0x60] sm:$0xf] }
   0xf   :  { %v34_v40 = vld [vmem:[%s2245_s0] sm:$0xff] }
  0x10   :  { %v114_v43 = vperm.slane %v34_v40, 0  ;;  %v115_v44 = vperm.slane %v34_v40, 2  ;;  %v116_v45 = vperm.slane %v34_v40, 4  ;;  %v117_v46 = vperm.slane %v34_v40, 6  ;;  %v577_v48 = vld [vmem:[%s2249_s4 + $0x40] sm:$0xff] }
  0x11   :  { %v230_v47 = vperm.slane %v34_v40, 1  ;;  %v231_v49 = vperm.slane %v34_v40, 3  ;;  %v232_v50 = vperm.slane %v34_v40, 5  ;;  %v233_v51 = vperm.slane %v34_v40, 7 }
  0x12   :  { %v1697_v54 = vperm.slane %v114_v43, 0  ;;  %v1699_v55 = vperm.slane %v115_v44, 0  ;;  %v1701_v56 = vperm.slane %v116_v45, 0  ;;  %v1703_v57 = vperm.slane %v117_v46, 0 }
  0x13   :  { %195 = vperm.xlu0 %1461, %v39_v7   ;;  %1465 = vset.pattern.permute.xlu1 %v1509_v2  ;;  %v1705_v58 = vperm.slane %v230_v47, 1  ;;  %v1709_v60 = vperm.slane %v231_v49, 1  ;;  %v1711_v61 = vperm.slane %v232_v50, 1  ;;  %v1713_v62 = vperm.slane %v233_v51, 1  ;;  %v572_v50 = vld [vmem:[%s2249_s4 + $0x18] sm:$0xff] }
  0x14   :  { %1466 = vset.pattern.permute.xlu2 %v1510_v3  ;;  %223 = vperm.xlu1 %1465, %v46_v4  }
  0x15   :  { %90 = vperm.xlu2 %1466, %v43_v8  }
  0x1b   :  { %1472 = vset.pattern.permute.xlu0 %v1510_v3 }
  0x1c   :  { %110 = vperm.xlu0 %1472, %v47_v1   ;;  %211 = vperm.xlu1 %1465, %v43_v8  }
  0x1d   :  { %1467 = vset.pattern.permute.xlu2 %v1509_v2 }
  0x1e   :  { %215 = vperm.xlu2 %1467, %v44_v9  }
  0x24   :  { %95 = vperm.xlu0 %1472, %v44_v9   ;;  %1468 = vset.pattern.permute.xlu1 %v1510_v3 }
  0x25   :  { %411 = vperm.xlu1 %1468, %v356_v10  }
  0x26   :  { %1469 = vset.pattern.permute.xlu2 %v1510_v3 }
  0x27   :  { %416 = vperm.xlu2 %1469, %v357_v11  }
  0x2c   :  { %80 = vperm.xlu0 %1472, %v41_v12  }
  0x2d   :  { %85 = vperm.xlu1 %1468, %v42_v5   ;;  %v576_v5 = vld [vmem:[%s2249_s4 + $0x38] sm:$0xff] }
  0x2f   :  { %1470 = vset.pattern.permute.xlu2 %v1509_v2 }
  0x30   :  { %203 = vperm.xlu2 %1470, %v41_v12  }
  0x34   :  { %396 = vperm.xlu0 %1472, %v353_v13  }
  0x35   :  { %401 = vperm.xlu1 %1468, %v354_v14  }
  0x38   :  { %1471 = vset.pattern.permute.xlu2 %v1510_v3 }
  0x39   :  { %406 = vperm.xlu2 %1471, %v355_v15   ;;  %v573_v15 = vld [vmem:[%s2249_s4 + $0x20] sm:$0xff] }
  0x3c   :  { %381 = vperm.xlu0 %1472, %v350_v16  }
  0x3d   :  { %70 = vperm.xlu1 %1468, %v39_v7  }
  0x41   :  { %75 = vperm.xlu2 %1471, %v40_v17  }
  0x44   :  { %55 = vperm.xlu0 %1472, %v36_v18  }
  0x45   :  { %1473 = vset.pattern.permute.xlu1 %v1509_v2 }
  0x46   :  { %199 = vperm.xlu1 %1473, %v40_v17  }
  0x49   :  { %391 = vperm.xlu2 %1471, %v352_v19  }
  0x4c   :  { %371 = vperm.xlu0 %1472, %v348_v20  }
  0x4e   :  { %1474 = vset.pattern.permute.xlu1 %v1510_v3 }
  0x4f   :  { %60 = vperm.xlu1 %1474, %v37_v21  }
  0x51   :  { %65 = vperm.xlu2 %1471, %v38_v22  }
  0x54   :  { %366 = vperm.xlu0 %1472, %v347_v23  }
  0x57   :  { %1475 = vset.pattern.permute.xlu1 %v1509_v2 }
  0x58   :  { %187 = vperm.xlu1 %1475, %v37_v21  }
  0x59   :  { %1476 = vset.pattern.permute.xlu2 %v1509_v2 }
  0x5a   :  { %191 = vperm.xlu2 %1476, %v38_v22  }
  0x5c   :  { %639 = vperm.xlu0 %1472, %v580_v24   ;;  %v106_v25 = vpop.permute.xlu2 %105 }
  0x5d   :  { %v170_v0 = vmul.f32 %v1697_v54, %v106_v25  ;;  %v171_v1 = vmul.f32 %v1699_v55, %v106_v25 }
  0x60   :  { %1477 = vset.pattern.permute.xlu1 %v1510_v3 }
  0x61   :  { %386 = vperm.xlu1 %1477, %v351_v26  }
  0x62   :  { %1478 = vset.pattern.permute.xlu2 %v1510_v3 }
  0x63   :  { %50 = vperm.xlu2 %1478, %v35_v27  }
  0x64   :  { %614 = vperm.xlu0 %1472, %v575_v28  }
  0x66   :  { %v220_v29 = vpop.permute.xlu2 %219 }
  0x67   :  { %v282_v4 = vmul.f32 %v1705_v58, %v220_v29  ;;  %v1724_v6 = vmul.f32 %v1709_v60, %v220_v29  ;;  %v1727_v7 = vmul.f32 %v1711_v61, %v220_v29  ;;  %v1730_v8 = vmul.f32 %v1713_v62, %v220_v29 }
  0x69   :  { %1479 = vset.pattern.permute.xlu1 %v1509_v2 }
  0x6a   :  { %179 = vperm.xlu1 %1479, %v35_v27  }
  0x6b   :  { %1480 = vset.pattern.permute.xlu2 %v1509_v2  ;;  %v172_v2 = vmul.f32 %v1701_v56, %v106_v25 }
  0x6c   :  { %609 = vperm.xlu0 %1472, %v574_v30   ;;  %183 = vperm.xlu2 %1480, %v36_v18  }
  0x6f   :  { %v91_v31 = vpop.permute.xlu2 %90 }
  0x70   :  { %v1733_v9 = vmul.f32 %v1697_v54, %v91_v31  ;;  %v1736_v10 = vmul.f32 %v1699_v55, %v91_v31  ;;  %v1739_v11 = vmul.f32 %v1701_v56, %v91_v31  ;;  %v1742_v12 = vmul.f32 %v1703_v57, %v91_v31 }
  0x72   :  { %1481 = vset.pattern.permute.xlu1 %v1510_v3 }
  0x73   :  { %376 = vperm.xlu1 %1481, %v349_v32  }
  0x74   :  { %584 = vperm.xlu0 %1472, %v569_v33   ;;  %1482 = vset.pattern.permute.xlu2 %v1510_v3  ;;  %v173_v3 = vmul.f32 %v1703_v57, %v106_v25 }
  0x75   :  { %v228_v35 = vpop.permute.xlu0 %227  ;;  %v1674_v36 = vpop.permute.xlu1 %421  ;;  %361 = vperm.xlu2 %1482, %v346_v34  }
  0x76   :  { %v290_v13 = vmul.f32 %v1705_v58, %v228_v35  ;;  %v291_v16 = vmul.f32 %v1709_v60, %v228_v35  ;;  %v292_v17 = vmul.f32 %v1711_v61, %v228_v35  ;;  %v293_v18 = vmul.f32 %v1713_v62, %v228_v35 }
  0x78   :  { %v216_v38 = vpop.permute.xlu2 %215 }
  0x79   :  { %v1754_v19 = vmul.f32 %v1705_v58, %v216_v38  ;;  %v1757_v20 = vmul.f32 %v1709_v60, %v216_v38  ;;  %v1760_v21 = vmul.f32 %v1711_v61, %v216_v38  ;;  %v1763_v22 = vmul.f32 %v1713_v62, %v216_v38 }
  0x7b   :  { %644 = vperm.xlu1 %1481, %v581_v37  }
  0x7d   :  { %v1685_v41 = vpop.permute.xlu0 %207  ;;  %v1687_v42 = vpop.permute.xlu1 %100  ;;  %634 = vperm.xlu2 %1482, %v579_v39   ;;  %v571_v39 = vld [vmem:[%s2249_s4 + $0x10] sm:$0xff] }
  0x7e   :  { %v1767_v23 = vmul.f32 %v1705_v58, %v1685_v41  ;;  %v166_v34 = vmul.f32 %v1697_v54, %v1687_v42  ;;  %v167_v35 = vmul.f32 %v1699_v55, %v1687_v42  ;;  %v168_v37 = vmul.f32 %v1701_v56, %v1687_v42 }
  0x7f   :  { %v169_v38 = vmul.f32 %v1703_v57, %v1687_v42  ;;  %v1796_v42 = vld [vmem:[%s2252_s7] sm:$0x3] }
  0x81   :  { %v1692_v52 = vpop.permute.xlu2 %416 }
  0x83   :  { %624 = vperm.xlu1 %1481, %v577_v48  }
  0x85   :  { %v1707_v59 = vpop.permute.xlu0 %195  ;;  %629 = vperm.xlu2 %1482, %v578_v53  }
  0x86   :  { %v224_v63 = vpop.permute.xlu1 %223 }
  0x87   :  { %v286_v24 = vmul.f32 %v1705_v58, %v224_v63  ;;  %v287_v25 = vmul.f32 %v1709_v60, %v224_v63  ;;  %v288_v26 = vmul.f32 %v1711_v61, %v224_v63  ;;  %v289_v27 = vmul.f32 %v1713_v62, %v224_v63 }
  0x89   :  { %v338_v46 = vadd.f32 %v286_v24, %v170_v0  ;;  %v339_v47 = vadd.f32 %v287_v25, %v171_v1  ;;  %v340_v48 = vadd.f32 %v288_v26, %v172_v2  ;;  %v341_v49 = vadd.f32 %v289_v27, %v173_v3 }
  0x8a   :  { %v1745_v14 = vpop.permute.xlu2 %203  ;;  %v1804_v1 = vmul.f32 %v1709_v60, %v1685_v41  ;;  %v1808_v2 = vmul.f32 %v1711_v61, %v1685_v41  ;;  %v1812_v3 = vmul.f32 %v1713_v62, %v1685_v41  ;;  %v335_v24 = vadd.f32 %v1724_v6, %v167_v35 }
  0x8b   :  { %619 = vperm.xlu1 %1481, %v576_v5   ;;  %v334_v5 = vadd.f32 %v282_v4, %v166_v34  ;;  %v336_v25 = vadd.f32 %v1727_v7, %v168_v37  ;;  %v337_v41 = vadd.f32 %v1730_v8, %v169_v38  ;;  %v468_v26 = vadd.f32 %v1692_v52, %v338_v46 }
  0x8c   :  { %v469_v4 = vadd.f32 %v1692_v52, %v339_v47  ;;  %v470_v27 = vadd.f32 %v1692_v52, %v340_v48 }
  0x8d   :  { %604 = vperm.xlu2 %1482, %v573_v15   ;;  %v520_v48 = vmax.f32 %v468_v26, 0.0  ;;  %v269_v26 = vmul.f32 %v1713_v62, %v1745_v14 }
  0x8e   :  { %v111_v28 = vpop.permute.xlu0 %110  ;;  %v1773_v29 = vpop.permute.xlu1 %211 }
  0x8f   :  { %v174_v30 = vmul.f32 %v1697_v54, %v111_v28  ;;  %v175_v31 = vmul.f32 %v1699_v55, %v111_v28  ;;  %v176_v32 = vmul.f32 %v1701_v56, %v111_v28  ;;  %v177_v33 = vmul.f32 %v1703_v57, %v111_v28 }
  0x90   :  { %v471_v28 = vadd.f32 %v1692_v52, %v341_v49  ;;  %v570_v52 = vld [vmem:[%s2249_s4 + $0x8] sm:$0xff]  ;;  %v521_v49 = vmax.f32 %v469_v4, 0.0  ;;  %v274_v4 = vmul.f32 %v1705_v58, %v1773_v29 }
  0x91   :  { %v342_v40 = vadd.f32 %v290_v13, %v174_v30  ;;  %v343_v43 = vadd.f32 %v291_v16, %v175_v31  ;;  %v344_v44 = vadd.f32 %v292_v17, %v176_v32  ;;  %v345_v45 = vadd.f32 %v293_v18, %v177_v33 }
  0x93   :  { %v472_v51 = vadd.f32 %v1674_v36, %v342_v40  ;;  %v473_v53 = vadd.f32 %v1674_v36, %v343_v43  ;;  %v474_v63 = vadd.f32 %v1674_v36, %v344_v44  ;;  %v475_v0 = vadd.f32 %v1674_v36, %v345_v45  ;;  %594 = vperm.xlu1 %1481, %v571_v39   ;;  %v1814_v13 = vpop.permute.xlu2 %406  ;;  %v971_v43 = vld [vmem:[%s2251_s6] sm:$0xff] }
  0x95   :  { %v524_v15 = vmax.f32 %v472_v51, 0.0  ;;  %v525_v16 = vmax.f32 %v473_v53, 0.0  ;;  %v526_v17 = vmax.f32 %v474_v63, 0.0  ;;  %v527_v36 = vmax.f32 %v475_v0, 0.0  ;;  %599 = vperm.xlu2 %1482, %v572_v50  }
  0x96   :  { %v96_v18 = vpop.permute.xlu0 %95  ;;  %1116 = vxpose.xlu0.b32.start.end [1/1] (short) (narrow) %v1796_v42, 32  ;;  %v522_v50 = vmax.f32 %v470_v27, 0.0  ;;  %v523_v51 = vmax.f32 %v471_v28, 0.0  ;;  %v266_v53 = vmul.f32 %v1705_v58, %v1745_v14  ;;  %v275_v28 = vmul.f32 %v1709_v60, %v1773_v29 }
  0x97   :  { %v412_v30 = vpop.permute.xlu1 %411  ;;  %v565_v31 = vpack.c.bf16 %v524_v15, %v524_v15  ;;  %v566_v32 = vpack.c.bf16 %v525_v16, %v525_v16  ;;  %v567_v33 = vpack.c.bf16 %v526_v17, %v526_v17  ;;  %v568_v34 = vpack.c.bf16 %v527_v36, %v527_v36 }
  0x98   :  { %v464_v39 = vadd.f32 %v412_v30, %v334_v5  ;;  %v465_v40 = vadd.f32 %v412_v30, %v335_v24  ;;  %v466_v6 = vadd.f32 %v412_v30, %v336_v25  ;;  %v467_v35 = vadd.f32 %v412_v30, %v337_v41 }
  0x99   :  { %v704_v7 = vsel %vm702_vm0, %v565_v31, 0  ;;  %v707_v8 = vsel %vm702_vm0, %v566_v32, 0  ;;  %v710_v37 = vsel %vm702_vm0, %v567_v33, 0  ;;  %v713_v38 = vsel %vm702_vm0, %v568_v34, 0 }
  0x9a   :  { %716 = vmatpush.bf16.msra.mxu0 %v704_v7  ;;  %759 = vmatpush.bf16.msra.mxu1 %v707_v8  ;;  %v516_v44 = vmax.f32 %v464_v39, 0.0  ;;  %v517_v45 = vmax.f32 %v465_v40, 0.0  ;;  %v518_v46 = vmax.f32 %v466_v6, 0.0  ;;  %v519_v47 = vmax.f32 %v467_v35, 0.0  ;;  %v974_v8 = vld [vmem:[%s2251_s6 + $0x18] sm:$0x3f] }
  0x9b   :  { %802 = vmatpush.bf16.msra.mxu2 %v710_v37  ;;  %845 = vmatpush.bf16.msra.mxu3 %v713_v38  ;;  %v162_v63 = vmul.f32 %v1697_v54, %v96_v18  ;;  %v163_v0 = vmul.f32 %v1699_v55, %v96_v18  ;;  %v164_v5 = vmul.f32 %v1701_v56, %v96_v18  ;;  %v1847_v27 = vpop.permute.xlu2 %75 }
  0x9c   :  { %589 = vperm.xlu1 %1481, %v570_v52   ;;  %v561_v16 = vpack.c.bf16 %v520_v48, %v516_v44  ;;  %v562_v17 = vpack.c.bf16 %v521_v49, %v517_v45  ;;  %v563_v36 = vpack.c.bf16 %v522_v50, %v518_v46  ;;  %v564_v24 = vpack.c.bf16 %v523_v51, %v519_v47 }
  0x9d   :  { %977 = vperm.xlu2 %1482, %v971_v43   ;;  %v267_v25 = vmul.f32 %v1709_v60, %v1745_v14  ;;  %v268_v41 = vmul.f32 %v1711_v61, %v1745_v14  ;;  %v276_v30 = vmul.f32 %v1711_v61, %v1773_v29  ;;  %v165_v31 = vmul.f32 %v1703_v57, %v96_v18  ;;  %v973_v18 = vld [vmem:[%s2251_s6 + $0x10] sm:$0xff] }
  0x9e   :  { %v81_v15 = vpop.permute.xlu0 %80  ;;  %717 = vmatpush.bf16.msra.mxu0 %v561_v16  ;;  %760 = vmatpush.bf16.msra.mxu1 %v562_v17  ;;  %v277_v33 = vmul.f32 %v1713_v62, %v1773_v29  ;;  %v330_v14 = vadd.f32 %v1754_v19, %v162_v63  ;;  %v331_v34 = vadd.f32 %v1757_v20, %v163_v0 }
  0x9f   :  { %v86_v32 = vpop.permute.xlu1 %85  ;;  %803 = vmatpush.bf16.msra.mxu2 %v563_v36  ;;  %846 = vmatpush.bf16.msra.mxu3 %v564_v24  ;;  %v150_v39 = vmul.f32 %v1697_v54, %v81_v15  ;;  %v332_v35 = vadd.f32 %v1760_v21, %v164_v5  ;;  %v151_v29 = vmul.f32 %v1699_v55, %v81_v15 }
  0xa0   :  { %v154_v40 = vmul.f32 %v1697_v54, %v86_v32  ;;  %v155_v6 = vmul.f32 %v1699_v55, %v86_v32  ;;  %v152_v7 = vmul.f32 %v1701_v56, %v81_v15  ;;  %v153_v19 = vmul.f32 %v1703_v57, %v81_v15 }
  0xa1   :  { %v156_v20 = vmul.f32 %v1701_v56, %v86_v32  ;;  %v157_v37 = vmul.f32 %v1703_v57, %v86_v32  ;;  %v326_v38 = vadd.f32 %v274_v4, %v1733_v9  ;;  %v327_v52 = vadd.f32 %v275_v28, %v1736_v10 }
  0xa2   :  { %v333_v21 = vadd.f32 %v1763_v22, %v165_v31  ;;  %v460_v43 = vadd.f32 %v1814_v13, %v330_v14  ;;  %v461_v44 = vadd.f32 %v1814_v13, %v331_v34  ;;  %v328_v45 = vadd.f32 %v276_v30, %v1739_v11 }
  0xa3   :  { %v329_v46 = vadd.f32 %v277_v33, %v1742_v12  ;;  %v462_v48 = vadd.f32 %v1814_v13, %v332_v35  ;;  %v318_v49 = vadd.f32 %v266_v53, %v150_v39  ;;  %v322_v9 = vadd.f32 %v1767_v23, %v154_v40  ;;  %v392_v16 = vpop.permute.xlu2 %391 }
  0xa4   :  { %987 = vperm.xlu1 %1481, %v973_v18   ;;  %v323_v10 = vadd.f32 %v1804_v1, %v155_v6  ;;  %v319_v50 = vadd.f32 %v267_v25, %v151_v29  ;;  %v320_v22 = vadd.f32 %v268_v41, %v152_v7  ;;  %v324_v51 = vadd.f32 %v1808_v2, %v156_v20 }
  0xa5   :  { %992 = vperm.xlu2 %1482, %v974_v8   ;;  %v321_v63 = vadd.f32 %v269_v26, %v153_v19  ;;  %v463_v5 = vadd.f32 %v1814_v13, %v333_v21  ;;  %v325_v12 = vadd.f32 %v1812_v3, %v157_v37  ;;  %v512_v23 = vmax.f32 %v460_v43, 0.0 }
  0xa6   :  { %v397_v47 = vpop.permute.xlu0 %396  ;;  %v513_v4 = vmax.f32 %v461_v44, 0.0  ;;  %v514_v30 = vmax.f32 %v462_v48, 0.0  ;;  %v448_v13 = vadd.f32 %v392_v16, %v318_v49  ;;  %v449_v32 = vadd.f32 %v392_v16, %v319_v50 }
  0xa7   :  { %v402_v0 = vpop.permute.xlu1 %401  ;;  %v452_v11 = vadd.f32 %v397_v47, %v322_v9  ;;  %v453_v15 = vadd.f32 %v397_v47, %v323_v10  ;;  %v454_v1 = vadd.f32 %v397_v47, %v324_v51  ;;  %v455_v25 = vadd.f32 %v397_v47, %v325_v12 }
  0xa8   :  { %v456_v17 = vadd.f32 %v402_v0, %v326_v38  ;;  %v457_v36 = vadd.f32 %v402_v0, %v327_v52  ;;  %v458_v53 = vadd.f32 %v402_v0, %v328_v45  ;;  %v459_v24 = vadd.f32 %v402_v0, %v329_v46 }
  0xa9   :  { %v515_v31 = vmax.f32 %v463_v5, 0.0  ;;  %v504_v33 = vmax.f32 %v452_v11, 0.0  ;;  %v505_v14 = vmax.f32 %v453_v15, 0.0  ;;  %v450_v3 = vadd.f32 %v392_v16, %v320_v22 }
  0xaa   :  { %v508_v41 = vmax.f32 %v456_v17, 0.0  ;;  %v509_v28 = vmax.f32 %v457_v36, 0.0  ;;  %v510_v2 = vmax.f32 %v458_v53, 0.0  ;;  %v511_v26 = vmax.f32 %v459_v24, 0.0 }
  0xab   :  { %v451_v34 = vadd.f32 %v392_v16, %v321_v63  ;;  %v506_v35 = vmax.f32 %v454_v1, 0.0  ;;  %v507_v29 = vmax.f32 %v455_v25, 0.0  ;;  %v500_v19 = vmax.f32 %v448_v13, 0.0  ;;  %v66_v45 = vpop.permute.xlu2 %65 }
  0xac   :  { %v557_v39 = vpack.c.bf16 %v512_v23, %v508_v41  ;;  %v558_v40 = vpack.c.bf16 %v513_v4, %v509_v28  ;;  %v559_v6 = vpack.c.bf16 %v514_v30, %v510_v2  ;;  %v560_v18 = vpack.c.bf16 %v515_v31, %v511_v26 }
  0xad   :  { %v501_v20 = vmax.f32 %v449_v32, 0.0  ;;  %v502_v8 = vmax.f32 %v450_v3, 0.0  ;;  %v503_v37 = vmax.f32 %v451_v34, 0.0  ;;  %v553_v38 = vpack.c.bf16 %v504_v33, %v500_v19 }
  0xae   :  { %718 = vmatpush.bf16.msra.mxu0 %v557_v39  ;;  %761 = vmatpush.bf16.msra.mxu1 %v558_v40  ;;  %v382_v47 = vpop.permute.xlu0 %381  ;;  %v258_v51 = vmul.f32 %v1705_v58, %v1707_v59  ;;  %v259_v63 = vmul.f32 %v1709_v60, %v1707_v59  ;;  %v260_v0 = vmul.f32 %v1711_v61, %v1707_v59 }
  0xaf   :  { %v71_v7 = vpop.permute.xlu1 %70  ;;  %804 = vmatpush.bf16.msra.mxu2 %v559_v6  ;;  %847 = vmatpush.bf16.msra.mxu3 %v560_v18  ;;  %v554_v52 = vpack.c.bf16 %v505_v14, %v501_v20  ;;  %v555_v21 = vpack.c.bf16 %v506_v35, %v502_v8  ;;  %v556_v43 = vpack.c.bf16 %v507_v29, %v503_v37 }
  0xb0   :  { %v142_v49 = vmul.f32 %v1697_v54, %v71_v7  ;;  %v143_v9 = vmul.f32 %v1699_v55, %v71_v7  ;;  %v144_v10 = vmul.f32 %v1701_v56, %v71_v7  ;;  %v145_v50 = vmul.f32 %v1703_v57, %v71_v7 }
  0xb1   :  { %v261_v5 = vmul.f32 %v1713_v62, %v1707_v59  ;;  %v146_v1 = vmul.f32 %v1697_v54, %v1847_v27  ;;  %v147_v59 = vmul.f32 %v1699_v55, %v1847_v27  ;;  %v148_v25 = vmul.f32 %v1701_v56, %v1847_v27 }
  0xb2   :  { %719 = vmatpush.bf16.msra.mxu0 %v553_v38  ;;  %762 = vmatpush.bf16.msra.mxu1 %v554_v52  ;;  %v310_v11 = vadd.f32 %v258_v51, %v142_v49  ;;  %v311_v15 = vadd.f32 %v259_v63, %v143_v9  ;;  %v312_v12 = vadd.f32 %v260_v0, %v144_v10 }
  0xb3   :  { %805 = vmatpush.bf16.msra.mxu2 %v555_v21  ;;  %848 = vmatpush.bf16.msra.mxu3 %v556_v43  ;;  %v313_v16 = vadd.f32 %v261_v5, %v145_v50  ;;  %v149_v41 = vmul.f32 %v1703_v57, %v1847_v27  ;;  %v1917_v14 = vmul.f32 %v1697_v54, %v66_v45 }
  0xb4   :  { %v192_v48 = vpop.permute.xlu2 %191  ;;  %v440_v28 = vadd.f32 %v382_v47, %v310_v11  ;;  %v441_v2 = vadd.f32 %v382_v47, %v311_v15  ;;  %v442_v26 = vadd.f32 %v382_v47, %v312_v12  ;;  %v1920_v3 = vmul.f32 %v1699_v55, %v66_v45 }
  0xb5   :  { %v443_v30 = vadd.f32 %v382_v47, %v313_v16  ;;  %v1923_v34 = vmul.f32 %v1701_v56, %v66_v45  ;;  %v1926_v39 = vmul.f32 %v1703_v57, %v66_v45  ;;  %v254_v21 = vmul.f32 %v1705_v58, %v192_v48 }
  0xb6   :  { %v56_v23 = vpop.permute.xlu0 %55  ;;  %v492_v29 = vmax.f32 %v440_v28, 0.0  ;;  %v493_v7 = vmax.f32 %v441_v2, 0.0  ;;  %v494_v19 = vmax.f32 %v442_v26, 0.0  ;;  %v255_v43 = vmul.f32 %v1709_v60, %v192_v48 }
  0xb7   :  { %v495_v20 = vmax.f32 %v443_v30, 0.0  ;;  %v257_v45 = vmul.f32 %v1713_v62, %v192_v48  ;;  %v130_v50 = vmul.f32 %v1697_v54, %v56_v23  ;;  %v131_v51 = vmul.f32 %v1699_v55, %v56_v23 }
  0xb8   :  { %v200_v44 = vpop.permute.xlu1 %199  ;;  %v132_v15 = vmul.f32 %v1701_v56, %v56_v23 }
  0xb9   :  { %v262_v17 = vmul.f32 %v1705_v58, %v200_v44  ;;  %v263_v36 = vmul.f32 %v1709_v60, %v200_v44  ;;  %v264_v53 = vmul.f32 %v1711_v61, %v200_v44  ;;  %v265_v24 = vmul.f32 %v1713_v62, %v200_v44 }
  0xba   :  { %v256_v44 = vmul.f32 %v1711_v61, %v192_v48  ;;  %v133_v48 = vmul.f32 %v1703_v57, %v56_v23 }
  0xbb   :  { %v314_v31 = vadd.f32 %v262_v17, %v146_v1  ;;  %v315_v13 = vadd.f32 %v263_v36, %v147_v59  ;;  %v316_v32 = vadd.f32 %v264_v53, %v148_v25  ;;  %v317_v33 = vadd.f32 %v265_v24, %v149_v41 }
  0xbd   :  { %v1906_v4 = vpop.permute.xlu2 %50 }
  0xbe   :  { %v372_v63 = vpop.permute.xlu0 %371  ;;  %v127_v26 = vmul.f32 %v1699_v55, %v1906_v4  ;;  %v129_v30 = vmul.f32 %v1703_v57, %v1906_v4 }
  0xc1   :  { %v1886_v46 = vpop.permute.xlu1 %60 }
  0xc2   :  { %v134_v12 = vmul.f32 %v1697_v54, %v1886_v46  ;;  %v135_v16 = vmul.f32 %v1699_v55, %v1886_v46  ;;  %v136_v53 = vmul.f32 %v1701_v56, %v1886_v46  ;;  %v137_v24 = vmul.f32 %v1703_v57, %v1886_v46 }
  0xc3   :  { %v128_v46 = vmul.f32 %v1701_v56, %v1906_v4  ;;  %v306_v56 = vadd.f32 %v254_v21, %v1917_v14  ;;  %v307_v57 = vadd.f32 %v255_v43, %v1920_v3 }
  0xc6   :  { %v184_v0 = vpop.permute.xlu2 %183 }
  0xc7   :  { %v246_v23 = vmul.f32 %v1705_v58, %v184_v0  ;;  %v247_v1 = vmul.f32 %v1709_v60, %v184_v0 }
  0xca   :  { %v1892_v22 = vpop.permute.xlu1 %187 }
  0xcb   :  { %v250_v5 = vmul.f32 %v1705_v58, %v1892_v22  ;;  %v251_v11 = vmul.f32 %v1709_v60, %v1892_v22  ;;  %v252_v17 = vmul.f32 %v1711_v61, %v1892_v22  ;;  %v253_v36 = vmul.f32 %v1713_v62, %v1892_v22 }
  0xcc   :  { %v126_v22 = vmul.f32 %v1697_v54, %v1906_v4  ;;  %v298_v54 = vadd.f32 %v246_v23, %v130_v50  ;;  %v308_v4 = vadd.f32 %v256_v44, %v1923_v34 }
  0xcd   :  { %v302_v28 = vadd.f32 %v250_v5, %v134_v12  ;;  %v303_v2 = vadd.f32 %v251_v11, %v135_v16 }
  0xcf   :  { %v433_v55 = vadd.f32 %v372_v63, %v303_v2 }
  0xd3   :  { %v387_v27 = vpop.permute.xlu1 %386 }
  0xd4   :  { %v444_v40 = vadd.f32 %v387_v27, %v314_v31  ;;  %v445_v6 = vadd.f32 %v387_v27, %v315_v13  ;;  %v446_v18 = vadd.f32 %v387_v27, %v316_v32  ;;  %v447_v35 = vadd.f32 %v387_v27, %v317_v33 }
  0xd5   :  { %v304_v13 = vadd.f32 %v252_v17, %v136_v53  ;;  %v248_v32 = vmul.f32 %v1711_v61, %v184_v0  ;;  %v249_v33 = vmul.f32 %v1713_v62, %v184_v0  ;;  %v299_v27 = vadd.f32 %v247_v1, %v131_v51 }
  0xd6   :  { %v496_v8 = vmax.f32 %v444_v40, 0.0  ;;  %v497_v37 = vmax.f32 %v445_v6, 0.0  ;;  %v498_v38 = vmax.f32 %v446_v18, 0.0  ;;  %v499_v52 = vmax.f32 %v447_v35, 0.0 }
  0xd7   :  { %v432_v40 = vadd.f32 %v372_v63, %v302_v28  ;;  %v309_v35 = vadd.f32 %v257_v45, %v1926_v39 }
  0xd8   :  { %v549_v47 = vpack.c.bf16 %v496_v8, %v492_v29  ;;  %v550_v49 = vpack.c.bf16 %v497_v37, %v493_v7  ;;  %v551_v9 = vpack.c.bf16 %v498_v38, %v494_v19  ;;  %v552_v10 = vpack.c.bf16 %v499_v52, %v495_v20  ;;  %v367_v29 = vpop.permute.xlu0 %366 }
  0xd9   :  { %v434_v7 = vadd.f32 %v372_v63, %v304_v13  ;;  %v428_v8 = vadd.f32 %v367_v29, %v298_v54  ;;  %v429_v37 = vadd.f32 %v367_v29, %v299_v27  ;;  %v300_v38 = vadd.f32 %v248_v32, %v132_v15  ;;  %v972_v13 = vld [vmem:[%s2251_s6 + $0x8] sm:$0xff]  ;;  %v1452_v32 = vld [vmem:[%s2248_s3 + $0x18] sm:$0xff]  ;;  %v1453_v54 = vld [vmem:[%s2248_s3 + $0x20] sm:$0xff] }
  0xda   :  { %720 = vmatpush.bf16.msra.mxu0 %v549_v47  ;;  %763 = vmatpush.bf16.msra.mxu1 %v550_v49  ;;  %v301_v52 = vadd.f32 %v249_v33, %v133_v48  ;;  %v484_v49 = vmax.f32 %v432_v40, 0.0 }
  0xdb   :  { %806 = vmatpush.bf16.msra.mxu2 %v551_v9  ;;  %849 = vmatpush.bf16.msra.mxu3 %v552_v10  ;;  %v485_v9 = vmax.f32 %v433_v55, 0.0  ;;  %v486_v39 = vmax.f32 %v434_v7, 0.0  ;;  %v430_v48 = vadd.f32 %v367_v29, %v300_v38  ;;  %v480_v1 = vmax.f32 %v428_v8, 0.0  ;;  %v1454_v55 = vld [vmem:[%s2248_s3 + $0x28] sm:$0xff] }
  0xdc   :  { %v180_v59 = vpop.permute.xlu1 %179  ;;  %v431_v12 = vadd.f32 %v367_v29, %v301_v52 }
  0xdd   :  { %v242_v25 = vmul.f32 %v1705_v58, %v180_v59  ;;  %v243_v41 = vmul.f32 %v1709_v60, %v180_v59  ;;  %v244_v31 = vmul.f32 %v1711_v61, %v180_v59  ;;  %v245_v58 = vmul.f32 %v1713_v62, %v180_v59  ;;  %v362_v62 = vpop.permute.xlu2 %361 }
  0xde   :  { %v305_v60 = vadd.f32 %v253_v36, %v137_v24  ;;  %v481_v59 = vmax.f32 %v429_v37, 0.0 }
  0xdf   :  { %v294_v6 = vadd.f32 %v242_v25, %v126_v22  ;;  %v295_v18 = vadd.f32 %v243_v41, %v127_v26  ;;  %v296_v61 = vadd.f32 %v244_v31, %v128_v46  ;;  %v297_v20 = vadd.f32 %v245_v58, %v129_v30  ;;  %v1449_v46 = vld [vmem:[%s2248_s3] sm:$0xff]  ;;  %v1450_v30 = vld [vmem:[%s2248_s3 + $0x8] sm:$0xff]  ;;  %v1451_v31 = vld [vmem:[%s2248_s3 + $0x10] sm:$0xff] }
  0xe0   :  { %v435_v19 = vadd.f32 %v372_v63, %v305_v60  ;;  %v482_v25 = vmax.f32 %v430_v48, 0.0  ;;  %v483_v41 = vmax.f32 %v431_v12, 0.0  ;;  %v1989_v58 = vpop.permute.xlu0 %639 }
  0xe1   :  { %v424_v14 = vadd.f32 %v362_v62, %v294_v6  ;;  %v425_v21 = vadd.f32 %v362_v62, %v295_v18  ;;  %v426_v10 = vadd.f32 %v362_v62, %v296_v61  ;;  %v427_v50 = vadd.f32 %v362_v62, %v297_v20  ;;  %v540_v18 = vld [vmem:[%s2248_s3 + $0x30] sm:$0x3] }
  0xe2   :  { %v487_v45 = vmax.f32 %v435_v19, 0.0  ;;  %v1226_v61 = vrot.slane %v1796_v42, 1 }
  0xe3   :  { %v476_v11 = vmax.f32 %v424_v14, 0.0  ;;  %v477_v15 = vmax.f32 %v425_v21, 0.0  ;;  %v478_v24 = vmax.f32 %v426_v10, 0.0  ;;  %v479_v23 = vmax.f32 %v427_v50, 0.0 }
  0xe5   :  { %v377_v47 = vpop.permute.xlu1 %376  ;;  %v541_v28 = vpack.c.bf16 %v480_v1, %v476_v11  ;;  %v542_v2 = vpack.c.bf16 %v481_v59, %v477_v15  ;;  %v543_v22 = vpack.c.bf16 %v482_v25, %v478_v24  ;;  %v544_v26 = vpack.c.bf16 %v483_v41, %v479_v23  ;;  %v2037_v20 = vpop.permute.xlu2 %634 }
  0xe6   :  { %v436_v3 = vadd.f32 %v377_v47, %v306_v56  ;;  %v437_v43 = vadd.f32 %v377_v47, %v307_v57  ;;  %v438_v34 = vadd.f32 %v377_v47, %v308_v4  ;;  %v439_v44 = vadd.f32 %v377_v47, %v309_v35 }
  0xe7   :  { %v672_v57 = vunpack.c.l.b16 %v540_v18 }
  0xe8   :  { %v488_v51 = vmax.f32 %v436_v3, 0.0  ;;  %v489_v63 = vmax.f32 %v437_v43, 0.0  ;;  %v490_v0 = vmax.f32 %v438_v34, 0.0  ;;  %v491_v5 = vmax.f32 %v439_v44, 0.0  ;;  %v1998_v60 = vpop.permute.xlu0 %614 }
  0xe9   :  { %v679_v35 = vpack.c.b16 %v672_v57, %v672_v57 }
  0xea   :  { %v545_v16 = vpack.c.bf16 %v488_v51, %v484_v49  ;;  %v546_v17 = vpack.c.bf16 %v489_v63, %v485_v9  ;;  %v547_v36 = vpack.c.bf16 %v490_v0, %v486_v39  ;;  %v548_v53 = vpack.c.bf16 %v491_v5, %v487_v45 }
  0xec   :  { %721 = vmatpush.bf16.msra.mxu0 %v545_v16  ;;  %764 = vmatpush.bf16.msra.mxu1 %v546_v17 }
  0xed   :  { %807 = vmatpush.bf16.msra.mxu2 %v547_v36  ;;  %850 = vmatpush.bf16.msra.mxu3 %v548_v53  ;;  %v2026_v4 = vpop.permute.xlu1 %644  ;;  %v2039_v47 = vpop.permute.xlu2 %629 }
  0xf0   :  { %722 = vmatpush.bf16.msra.mxu0 %v541_v28  ;;  %765 = vmatpush.bf16.msra.mxu1 %v542_v2  ;;  %v2007_v33 = vpop.permute.xlu0 %609 }
  0xf1   :  { %808 = vmatpush.bf16.msra.mxu2 %v543_v22  ;;  %851 = vmatpush.bf16.msra.mxu3 %v544_v26 }
  0xf3   :  { %1405 = vmatmul.msk.bf16.vlgmr.msra.gmra.mxu0 %vm680_vm1, %v1449_v46  ;;  %1412 = vmatmul.msk.bf16.vlgmr.msra.gmra.mxu1 %vm680_vm1, %v1449_v46 }
  0xf4   :  { %1419 = vmatmul.msk.bf16.vlgmr.msra.gmra.mxu2 %vm680_vm1, %v1449_v46  ;;  %1426 = vmatmul.msk.bf16.vlgmr.msra.gmra.mxu3 %vm680_vm1, %v1449_v46 }
  0xf5   :  { %v2032_v7 = vpop.permute.xlu1 %624  ;;  %v605_v51 = vpop.permute.xlu2 %604 }
  0xf8   :  { %v585_v27 = vpop.permute.xlu0 %584 }
  0xfd   :  { %v2034_v19 = vpop.permute.xlu1 %619  ;;  %v600_v59 = vpop.permute.xlu2 %599 }
 0x103   :  { %1406 = vmatmul.msk.bf16.gmra.mxu0 %vm680_vm1, %v1450_v30  ;;  %1413 = vmatmul.msk.bf16.gmra.mxu1 %vm680_vm1, %v1450_v30 }
 0x104   :  { %1420 = vmatmul.msk.bf16.gmra.mxu2 %vm680_vm1, %v1450_v30  ;;  %1427 = vmatmul.msk.bf16.gmra.mxu3 %vm680_vm1, %v1450_v30 }
 0x105   :  { %v595_v62 = vpop.permute.xlu1 %594 }
 0x10e   :  { %v590_v49 = vpop.permute.xlu1 %589 }
 0x113   :  { %1407 = vmatmul.msk.bf16.gmra.mxu0 %vm680_vm1, %v1451_v31  ;;  %1414 = vmatmul.msk.bf16.gmra.mxu1 %vm680_vm1, %v1451_v31 }
 0x114   :  { %1421 = vmatmul.msk.bf16.gmra.mxu2 %vm680_vm1, %v1451_v31  ;;  %1428 = vmatmul.msk.bf16.gmra.mxu3 %vm680_vm1, %v1451_v31 }
 0x11c   :  { %982 = vperm.xlu0 %1472, %v972_v13  }
 0x123   :  { %1408 = vmatmul.msk.bf16.gmra.mxu0 %vm680_vm1, %v1452_v32  ;;  %1415 = vmatmul.msk.bf16.gmra.mxu1 %vm680_vm1, %v1452_v32 }
 0x124   :  { %1422 = vmatmul.msk.bf16.gmra.mxu2 %vm680_vm1, %v1452_v32  ;;  %1429 = vmatmul.msk.bf16.gmra.mxu3 %vm680_vm1, %v1452_v32 }
 0x133   :  { %1409 = vmatmul.msk.bf16.gmra.mxu0 %vm680_vm1, %v1453_v54  ;;  %1416 = vmatmul.msk.bf16.gmra.mxu1 %vm680_vm1, %v1453_v54 }
 0x134   :  { %1423 = vmatmul.msk.bf16.gmra.mxu2 %vm680_vm1, %v1453_v54  ;;  %1430 = vmatmul.msk.bf16.gmra.mxu3 %vm680_vm1, %v1453_v54 }
 0x13a   :  { %v1132_v40 = vpop.trf.xlu0 }
 0x13b   :  { %1150 = vperm.xlu1 %1481, %v1132_v40  }
 0x142   :  { %v1133_v6 = vpop.trf.xlu0 }
 0x143   :  { %1155 = vperm.xlu2 %1482, %v1133_v6   ;;  %1410 = vmatmul.msk.bf16.gmra.mxu0 %vm680_vm1, %v1454_v55 }
 0x144   :  { %1417 = vmatmul.msk.bf16.gmra.mxu1 %vm680_vm1, %v1454_v55  ;;  %1424 = vmatmul.msk.bf16.gmra.mxu2 %vm680_vm1, %v1454_v55 }
 0x145   :  { %1431 = vmatmul.msk.bf16.gmra.mxu3 %vm680_vm1, %v1454_v55 }
 0x14a   :  { %v1134_v56 = vpop.trf.xlu0 }
 0x14b   :  { %1160 = vperm.xlu1 %1481, %v1134_v56  }
 0x152   :  { %v1135_v29 = vpop.trf.xlu0 }
 0x153   :  { %1165 = vperm.xlu1 %1481, %v1135_v29   ;;  %1411 = vmatmul.msk.bf16.gmra.mxu0 %vm680_vm1, %v679_v35 }
 0x154   :  { %1418 = vmatmul.msk.bf16.gmra.mxu1 %vm680_vm1, %v679_v35  ;;  %1425 = vmatmul.msk.bf16.gmra.mxu2 %vm680_vm1, %v679_v35 }
 0x155   :  { %1432 = vmatmul.msk.bf16.gmra.mxu3 %vm680_vm1, %v679_v35 }
 0x169   :  { %1228 = vxpose.xlu2.b32.start.end [1/1] (short) (narrow) %v1226_v61, 32 }
 0x170   :  { %v724_v8 = vpop.f32.mrf.mxu0  ;;  %v767_v37 = vpop.f32.mrf.mxu1 }
 0x171   :  { %v725_v38 = vadd.f32 %v724_v8, %v585_v27  ;;  %v768_v52 = vadd.f32 %v767_v37, %v585_v27 }
 0x173   :  { %v887_v42 = vmax.f32 %v725_v38, 0.0  ;;  %v888_v45 = vmax.f32 %v768_v52, 0.0 }
 0x177   :  { %v810_v9 = vpop.f32.mrf.mxu2  ;;  %v853_v14 = vpop.f32.mrf.mxu3 }
 0x178   :  { %v811_v21 = vadd.f32 %v810_v9, %v585_v27  ;;  %v854_v3 = vadd.f32 %v853_v14, %v585_v27  ;;  %v726_v43 = vpop.f32.mrf.mxu0  ;;  %v769_v34 = vpop.f32.mrf.mxu1 }
 0x179   :  { %v727_v44 = vadd.f32 %v726_v43, %v590_v49  ;;  %v770_v39 = vadd.f32 %v769_v34, %v590_v49 }
 0x17a   :  { %v889_v17 = vmax.f32 %v811_v21, 0.0  ;;  %v890_v36 = vmax.f32 %v854_v3, 0.0 }
 0x17b   :  { %v891_v10 = vmax.f32 %v727_v44, 0.0  ;;  %v892_v50 = vmax.f32 %v770_v39, 0.0 }
 0x17d   :  { %v2041_v63 = vpack.c.bf16 %v891_v10, %v887_v42  ;;  %v2043_v0 = vpack.c.bf16 %v892_v50, %v888_v45 }
 0x17f   :  { %v812_v5 = vpop.f32.mrf.mxu2  ;;  %v855_v11 = vpop.f32.mrf.mxu3 }
 0x180   :  { %v813_v15 = vadd.f32 %v812_v5, %v590_v49  ;;  %v856_v48 = vadd.f32 %v855_v11, %v590_v49  ;;  %v729_v12 = vpop.f32.mrf.mxu0  ;;  %v772_v16 = vpop.f32.mrf.mxu1 }
 0x181   :  { %v730_v25 = vadd.f32 %v729_v12, %v595_v62  ;;  %v773_v41 = vadd.f32 %v772_v16, %v595_v62 }
 0x182   :  { %v893_v53 = vmax.f32 %v813_v15, 0.0  ;;  %v894_v24 = vmax.f32 %v856_v48, 0.0 }
 0x183   :  { %v895_v31 = vmax.f32 %v730_v25, 0.0  ;;  %v896_v13 = vmax.f32 %v773_v41, 0.0 }
 0x184   :  { %v2045_v23 = vpack.c.bf16 %v893_v53, %v889_v17  ;;  %v2047_v1 = vpack.c.bf16 %v894_v24, %v890_v36 }
 0x187   :  { %v815_v28 = vpop.f32.mrf.mxu2  ;;  %v858_v2 = vpop.f32.mrf.mxu3 }
 0x188   :  { %v731_v22 = vpop.f32.mrf.mxu0  ;;  %v774_v26 = vpop.f32.mrf.mxu1  ;;  %v816_v55 = vadd.f32 %v815_v28, %v595_v62  ;;  %v859_v6 = vadd.f32 %v858_v2, %v595_v62 }
 0x189   :  { %v732_v46 = vadd.f32 %v731_v22, %v600_v59  ;;  %v775_v30 = vadd.f32 %v774_v26, %v600_v59 }
 0x18a   :  { %v897_v8 = vmax.f32 %v816_v55, 0.0  ;;  %v898_v37 = vmax.f32 %v859_v6, 0.0 }
 0x18b   :  { %v899_v32 = vmax.f32 %v732_v46, 0.0  ;;  %v900_v54 = vmax.f32 %v775_v30, 0.0 }
 0x18d   :  { %v2049_v27 = vpack.c.bf16 %v899_v32, %v895_v31  ;;  %v2051_v40 = vpack.c.bf16 %v900_v54, %v896_v13 }
 0x18f   :  { %v817_v18 = vpop.f32.mrf.mxu2  ;;  %v860_v56 = vpop.f32.mrf.mxu3 }
 0x190   :  { %v818_v57 = vadd.f32 %v817_v18, %v600_v59  ;;  %v861_v35 = vadd.f32 %v860_v56, %v600_v59  ;;  %v734_v29 = vpop.f32.mrf.mxu0  ;;  %v777_v61 = vpop.f32.mrf.mxu1 }
 0x191   :  { %v735_v14 = vadd.f32 %v734_v29, %v605_v51  ;;  %v778_v21 = vadd.f32 %v777_v61, %v605_v51 }
 0x192   :  { %v901_v38 = vmax.f32 %v818_v57, 0.0  ;;  %v902_v52 = vmax.f32 %v861_v35, 0.0 }
 0x193   :  { %v903_v42 = vmax.f32 %v735_v14, 0.0  ;;  %v904_v45 = vmax.f32 %v778_v21, 0.0 }
 0x194   :  { %v2053_v49 = vpack.c.bf16 %v901_v38, %v897_v8  ;;  %v2055_v9 = vpack.c.bf16 %v902_v52, %v898_v37 }
 0x197   :  { %v820_v3 = vpop.f32.mrf.mxu2  ;;  %v863_v43 = vpop.f32.mrf.mxu3 }
 0x198   :  { %v736_v34 = vpop.f32.mrf.mxu0  ;;  %v779_v62 = vpop.f32.mrf.mxu1  ;;  %v821_v15 = vadd.f32 %v820_v3, %v605_v51  ;;  %v864_v48 = vadd.f32 %v863_v43, %v605_v51 }
 0x199   :  { %v737_v44 = vadd.f32 %v736_v34, %v2007_v33  ;;  %v780_v39 = vadd.f32 %v779_v62, %v2007_v33 }
 0x19a   :  { %v905_v59 = vmax.f32 %v821_v15, 0.0  ;;  %v906_v25 = vmax.f32 %v864_v48, 0.0 }
 0x19b   :  { %v907_v10 = vmax.f32 %v737_v44, 0.0  ;;  %v908_v50 = vmax.f32 %v780_v39, 0.0 }
 0x19d   :  { %v2059_v5 = vpack.c.bf16 %v907_v10, %v903_v42  ;;  %v2061_v11 = vpack.c.bf16 %v908_v50, %v904_v45 }
 0x19f   :  { %v822_v12 = vpop.f32.mrf.mxu2  ;;  %v865_v16 = vpop.f32.mrf.mxu3 }
 0x1a0   :  { %v823_v17 = vadd.f32 %v822_v12, %v2007_v33  ;;  %v866_v36 = vadd.f32 %v865_v16, %v2007_v33  ;;  %v739_v53 = vpop.f32.mrf.mxu0  ;;  %v782_v24 = vpop.f32.mrf.mxu1 }
 0x1a1   :  { %v2086_v45 = vadd.f32 %v739_v53, %v1998_v60  ;;  %v2089_v10 = vadd.f32 %v782_v24, %v1998_v60 }
 0x1a2   :  { %v909_v41 = vmax.f32 %v823_v17, 0.0  ;;  %v910_v28 = vmax.f32 %v866_v36, 0.0 }
 0x1a4   :  { %v2065_v2 = vpack.c.bf16 %v909_v41, %v905_v59  ;;  %v2067_v22 = vpack.c.bf16 %v910_v28, %v906_v25 }
 0x1a7   :  { %v2069_v26 = vpop.f32.mrf.mxu2  ;;  %v2071_v46 = vpop.f32.mrf.mxu3 }
 0x1a8   :  { %v741_v51 = vpop.f32.mrf.mxu0  ;;  %v784_v30 = vpop.f32.mrf.mxu1 }
 0x1a9   :  { %v2096_v36 = vadd.f32 %v741_v51, %v2034_v19  ;;  %v2099_v59 = vadd.f32 %v784_v30, %v2034_v19 }
 0x1af   :  { %v2073_v31 = vpop.f32.mrf.mxu2  ;;  %v2075_v13 = vpop.f32.mrf.mxu3 }
 0x1b0   :  { %v744_v33 = vpop.f32.mrf.mxu0  ;;  %v787_v32 = vpop.f32.mrf.mxu1 }
 0x1b1   :  { %v745_v24 = vadd.f32 %v744_v33, %v2032_v7  ;;  %v788_v41 = vadd.f32 %v787_v32, %v2032_v7 }
 0x1b7   :  { %v2077_v54 = vpop.f32.mrf.mxu2  ;;  %v2079_v55 = vpop.f32.mrf.mxu3 }
 0x1b8   :  { %v746_v6 = vpop.f32.mrf.mxu0  ;;  %v789_v18 = vpop.f32.mrf.mxu1 }
 0x1b9   :  { %v747_v48 = vadd.f32 %v746_v6, %v2039_v47  ;;  %v790_v12 = vadd.f32 %v789_v18, %v2039_v47 }
 0x1bb   :  { %v924_v33 = vmax.f32 %v790_v12, 0.0 }
 0x1bf   :  { %v832_v56 = vpop.f32.mrf.mxu2  ;;  %v875_v57 = vpop.f32.mrf.mxu3 }
 0x1c0   :  { %v749_v35 = vpop.f32.mrf.mxu0 }
 0x1c1   :  { %v792_v29 = vpop.f32.mrf.mxu1  ;;  %v750_v50 = vadd.f32 %v749_v35, %v2037_v20 }
 0x1c2   :  { %v793_v15 = vadd.f32 %v792_v29, %v2037_v20 }
 0x1c3   :  { %v927_v29 = vmax.f32 %v750_v50, 0.0  ;;  %v916_v50 = vmax.f32 %v2099_v59, 0.0 }
 0x1c7   :  { %v835_v61 = vpop.f32.mrf.mxu2 }
 0x1c8   :  { %v878_v8 = vpop.f32.mrf.mxu3  ;;  %v751_v37 = vpop.f32.mrf.mxu0 }
 0x1c9   :  { %v794_v38 = vpop.f32.mrf.mxu1  ;;  %v752_v62 = vadd.f32 %v751_v37, %v1989_v58  ;;  %v928_v37 = vmax.f32 %v793_v15, 0.0  ;;  %v879_v15 = vadd.f32 %v878_v8, %v2037_v20  ;;  %v874_v8 = vadd.f32 %v2079_v55, %v2032_v7 }
 0x1ca   :  { %v795_v44 = vadd.f32 %v794_v38, %v1989_v58 }
 0x1cb   :  { %v931_v53 = vmax.f32 %v752_v62, 0.0 }
 0x1cc   :  { %v932_v25 = vmax.f32 %v795_v44, 0.0 }
 0x1cd   :  { %v963_v44 = vpack.c.bf16 %v931_v53, %v927_v29 }
 0x1cf   :  { %v837_v52 = vpop.f32.mrf.mxu2 }
 0x1d0   :  { %v880_v14 = vpop.f32.mrf.mxu3  ;;  %v754_v21 = vpop.f32.mrf.mxu0  ;;  %v838_v32 = vadd.f32 %v837_v52, %v1989_v58  ;;  %v876_v52 = vadd.f32 %v875_v57, %v2039_v47  ;;  %v912_v57 = vmax.f32 %v2089_v10, 0.0 }
 0x1d1   :  { %v797_v3 = vpop.f32.mrf.mxu1  ;;  %v755_v43 = vadd.f32 %v754_v21, %v2026_v4 }
 0x1d2   :  { %v798_v34 = vadd.f32 %v797_v3, %v2026_v4  ;;  %v923_v3 = vmax.f32 %v747_v48, 0.0 }
 0x1d3   :  { %v935_v39 = vmax.f32 %v755_v43, 0.0  ;;  %v881_v43 = vadd.f32 %v880_v14, %v1989_v58  ;;  %v833_v58 = vadd.f32 %v832_v56, %v2039_v47  ;;  %v933_v14 = vmax.f32 %v838_v32, 0.0 }
 0x1d4   :  { %v936_v42 = vmax.f32 %v798_v34, 0.0  ;;  %v911_v47 = vmax.f32 %v2086_v45, 0.0  ;;  %v869_v45 = vadd.f32 %v2071_v46, %v1998_v60 }
 0x1d5   :  { %v967_v16 = vpack.c.bf16 %v935_v39, %v935_v39  ;;  %v964_v39 = vpack.c.bf16 %v932_v25, %v928_v37  ;;  %v934_v53 = vmax.f32 %v881_v43, 0.0  ;;  %v956_v37 = vpack.c.bf16 %v916_v50, %v912_v57  ;;  %v983_v50 = vpop.permute.xlu0 %982 }
 0x1d6   :  { %v968_v17 = vpack.c.bf16 %v936_v42, %v936_v42  ;;  %v915_v42 = vmax.f32 %v2096_v36, 0.0 }
 0x1d7   :  { %v840_v28 = vpop.f32.mrf.mxu2  ;;  %v1012_v6 = vsel %vm702_vm0, %v967_v16, 0  ;;  %v919_v16 = vmax.f32 %v745_v24, 0.0 }
 0x1d8   :  { %v883_v35 = vpop.f32.mrf.mxu3  ;;  %v1015_v18 = vsel %vm702_vm0, %v968_v17, 0  ;;  %v841_v51 = vadd.f32 %v840_v28, %v2026_v4  ;;  %1024 = vmatpush.bf16.msrb.mxu0 %v1012_v6  ;;  %v756_v21 = vpop.f32.mrf.mxu0  ;;  %v920_v17 = vmax.f32 %v788_v41, 0.0  ;;  %v930_v41 = vmax.f32 %v879_v15, 0.0 }
 0x1d9   :  { %v884_v38 = vadd.f32 %v883_v35, %v2026_v4  ;;  %1043 = vmatpush.bf16.msrb.mxu1 %v1015_v18  ;;  %v799_v30 = vpop.f32.mrf.mxu1  ;;  %v836_v4 = vadd.f32 %v835_v61, %v2037_v20  ;;  %v959_v25 = vpack.c.bf16 %v923_v3, %v919_v16  ;;  %v831_v20 = vadd.f32 %v2077_v54, %v2032_v7  ;;  %v1341_v21 = vld [vmem:[%s2253_s8] sm:$0x3]  ;;  %v2134_v3 = vpop.permute.xlu2 %977 }
 0x1da   :  { %v937_v34 = vmax.f32 %v841_v51, 0.0  ;;  %v960_v61 = vpack.c.bf16 %v924_v33, %v920_v17  ;;  %v828_v35 = vadd.f32 %v2073_v31, %v2034_v19  ;;  %v871_v6 = vadd.f32 %v2075_v13, %v2034_v19 }
 0x1db   :  { %v938_v62 = vmax.f32 %v884_v38, 0.0  ;;  %v929_v24 = vmax.f32 %v836_v4, 0.0  ;;  %v925_v54 = vmax.f32 %v833_v58, 0.0  ;;  %v926_v7 = vmax.f32 %v876_v52, 0.0 }
 0x1dc   :  { %v969_v48 = vpack.c.bf16 %v937_v34, %v937_v34  ;;  %1025 = vmatpush.bf16.msrb.mxu0 %v963_v44  ;;  %v966_v18 = vpack.c.bf16 %v934_v53, %v930_v41  ;;  %v955_v29 = vpack.c.bf16 %v915_v42, %v911_v47  ;;  %v826_v51 = vadd.f32 %v2069_v26, %v1998_v60 }
 0x1dd   :  { %v970_v12 = vpack.c.bf16 %v938_v62, %v938_v62  ;;  %1044 = vmatpush.bf16.msrb.mxu1 %v964_v39  ;;  %v965_v55 = vpack.c.bf16 %v933_v14, %v929_v24  ;;  %v921_v10 = vmax.f32 %v831_v20, 0.0  ;;  %v922_v38 = vmax.f32 %v874_v8, 0.0 }
 0x1de   :  { %v1018_v36 = vsel %vm702_vm0, %v969_v48, 0  ;;  %v917_v19 = vmax.f32 %v828_v35, 0.0  ;;  %v918_v31 = vmax.f32 %v871_v6, 0.0  ;;  %v913_v26 = vmax.f32 %v826_v51, 0.0 }
 0x1df   :  { %v1021_v59 = vsel %vm702_vm0, %v970_v12, 0  ;;  %v842_v28 = vpop.f32.mrf.mxu2  ;;  %1062 = vmatpush.bf16.msrb.mxu2 %v1018_v36  ;;  %v961_v13 = vpack.c.bf16 %v925_v54, %v921_v10  ;;  %v962_v30 = vpack.c.bf16 %v926_v7, %v922_v38  ;;  %v914_v33 = vmax.f32 %v869_v45, 0.0 }
 0x1e0   :  { %v885_v56 = vpop.f32.mrf.mxu3  ;;  %1081 = vmatpush.bf16.msrb.mxu3 %v1021_v59  ;;  %1026 = vmatpush.bf16.msrb.mxu0 %v959_v25  ;;  %v957_v60 = vpack.c.bf16 %v917_v19, %v913_v26 }
 0x1e1   :  { %1045 = vmatpush.bf16.msrb.mxu1 %v960_v61  ;;  %v958_v46 = vpack.c.bf16 %v918_v31, %v914_v33 }
 0x1e3   :  { %1063 = vmatpush.bf16.msrb.mxu2 %v965_v55 }
 0x1e4   :  { %1082 = vmatpush.bf16.msrb.mxu3 %v966_v18  ;;  %1027 = vmatpush.bf16.msrb.mxu0 %v955_v29 }
 0x1e5   :  { %1046 = vmatpush.bf16.msrb.mxu1 %v956_v37 }
 0x1e7   :  { %1064 = vmatpush.bf16.msrb.mxu2 %v961_v13 }
 0x1e8   :  { %1083 = vmatpush.bf16.msrb.mxu3 %v962_v30  ;;  %1028 = vmatpush.bf16.msrb.mxu0 %v2059_v5  ;;  %v1455_v5 = vld [vmem:[%s2250_s5] sm:$0xff] }
 0x1e9   :  { %1047 = vmatpush.bf16.msrb.mxu1 %v2061_v11  ;;  %v2147_v11 = vpop.permute.xlu2 %992 }
 0x1ea   :  { %1344 = vperm.xlu2 %1482, %v1341_v21  }
 0x1eb   :  { %1065 = vmatpush.bf16.msrb.mxu2 %v957_v60 }
 0x1ec   :  { %1084 = vmatpush.bf16.msrb.mxu3 %v958_v46  ;;  %1029 = vmatpush.bf16.msrb.mxu0 %v2049_v27  ;;  %v1456_v27 = vld [vmem:[%s2250_s5 + $0x8] sm:$0x70] }
 0x1ed   :  { %1048 = vmatpush.bf16.msrb.mxu1 %v2051_v40 }
 0x1ef   :  { %1066 = vmatpush.bf16.msrb.mxu2 %v2065_v2  ;;  %v2169_v2 = vpop.permute.xlu1 %987 }
 0x1f0   :  { %1085 = vmatpush.bf16.msrb.mxu3 %v2067_v22  ;;  %1030 = vmatpush.bf16.msrb.mxu0 %v2041_v63 }
 0x1f1   :  { %1049 = vmatpush.bf16.msrb.mxu1 %v2043_v0  ;;  %v2155_v63 = vpop.permute.xlu2 %1155  ;;  %v1439_v0 = vld [vmem:[%s2250_s5 + $0x8] sm:$0xf]  ;;  %s1511_s5 = smov [#allocation2]  }
 0x1f2   :  { %v1440_v40 = vor.u32 %v1456_v27, %v1439_v0  ;;  %s1370_s24 = sshll.u32 %s1511_s5, 4  ;;  %s1371_s24 = int_to_ptr.vmem [resolvable:$true] %s1370_s24 }
 0x1f3   :  { %1067 = vmatpush.bf16.msrb.mxu2 %v2053_v49  ;;  %1441 = vmatmul.msk.bf16.vlgmr.msrb.gmra.mxu0 %vm680_vm1, %v1455_v5 }
 0x1f4   :  { %1086 = vmatpush.bf16.msrb.mxu3 %v2055_v9  ;;  %1443 = vmatmul.msk.bf16.vlgmr.msrb.gmra.mxu1 %vm680_vm1, %v1455_v5 }
 0x1f7   :  { %1068 = vmatpush.bf16.msrb.mxu2 %v2045_v23  ;;  %v2171_v22 = vpop.permute.xlu1 %1150 }
 0x1f8   :  { %1087 = vmatpush.bf16.msrb.mxu3 %v2047_v1 }
 0x1fa   :  { %1445 = vmatmul.msk.bf16.vlgmr.msrb.gmra.mxu2 %vm680_vm1, %v1455_v5 }
 0x1fb   :  { %1447 = vmatmul.msk.bf16.vlgmr.msrb.gmra.mxu3 %vm680_vm1, %v1455_v5 }
 0x1ff   :  { %v2173_v32 = vpop.permute.xlu1 %1160 }
 0x202   :  { %v1244_v49 = vpop.trf.xlu2 }
 0x203   :  { %1262 = vperm.xlu1 %1481, %v1244_v49   ;;  %1442 = vmatmul.msk.bf16.gmra.mxu0 %vm680_vm1, %v1440_v40 }
 0x204   :  { %1444 = vmatmul.msk.bf16.gmra.mxu1 %vm680_vm1, %v1440_v40 }
 0x207   :  { %v2175_v62 = vpop.permute.xlu1 %1165 }
 0x20a   :  { %v1245_v23 = vpop.trf.xlu2  ;;  %1446 = vmatmul.msk.bf16.gmra.mxu2 %vm680_vm1, %v1440_v40 }
 0x20b   :  { %1448 = vmatmul.msk.bf16.gmra.mxu3 %vm680_vm1, %v1440_v40  ;;  %1267 = vperm.xlu1 %1481, %v1245_v23  }
 0x212   :  { %v1246_v1 = vpop.trf.xlu2 }
 0x213   :  { %1272 = vperm.xlu0 %1472, %v1246_v1  }
 0x21a   :  { %v1247_v9 = vpop.trf.xlu2 }
 0x21b   :  { %1277 = vperm.xlu1 %1481, %v1247_v9  }
 0x270   :  { %v1032_v43 = vpop.f32.mrf.mxu0 }
 0x271   :  { %v1051_v34 = vpop.f32.mrf.mxu1  ;;  %v1033_v48 = vadd.f32 %v1032_v43, %v2134_v3 }
 0x272   :  { %v1052_v12 = vadd.f32 %v1051_v34, %v2134_v3 }
 0x273   :  { %v1099_v25 = vmax.f32 %v1033_v48, 0.0 }
 0x274   :  { %v1100_v61 = vmax.f32 %v1052_v12, 0.0 }
 0x275   :  { %v2177_v42 = vpop.permute.xlu1 %1262  ;;  %v1168_v6 = vmul.f32 %v2171_v22, %v1099_v25 }
 0x276   :  { %v1169_v54 = vmul.f32 %v2171_v22, %v1100_v61  ;;  %v1280_v29 = vmul.f32 %v2177_v42, %v1099_v25  ;;  %v1281_v37 = vmul.f32 %v2177_v42, %v1100_v61 }
 0x278   :  { %v1034_v44 = vpop.f32.mrf.mxu0 }
 0x279   :  { %v1053_v39 = vpop.f32.mrf.mxu1  ;;  %v1035_v16 = vadd.f32 %v1034_v44, %v983_v50 }
 0x27a   :  { %v1054_v17 = vadd.f32 %v1053_v39, %v983_v50 }
 0x27b   :  { %v1103_v14 = vmax.f32 %v1035_v16, 0.0 }
 0x27c   :  { %v1104_v53 = vmax.f32 %v1054_v17, 0.0 }
 0x27d   :  { %v1070_v4 = vpop.f32.mrf.mxu2  ;;  %v2183_v20 = vpop.permute.xlu1 %1267  ;;  %v1172_v28 = vmul.f32 %v2155_v63, %v1103_v14 }
 0x27e   :  { %v1089_v15 = vpop.f32.mrf.mxu3  ;;  %v1071_v8 = vadd.f32 %v1070_v4, %v2134_v3  ;;  %v1173_v57 = vmul.f32 %v2155_v63, %v1104_v53  ;;  %v1284_v7 = vmul.f32 %v2183_v20, %v1103_v14  ;;  %v1285_v45 = vmul.f32 %v2183_v20, %v1104_v53 }
 0x27f   :  { %v1090_v35 = vadd.f32 %v1089_v15, %v2134_v3  ;;  %v1184_v19 = vadd.f32 %v1172_v28, %v1168_v6 }
 0x280   :  { %v1037_v58 = vpop.f32.mrf.mxu0  ;;  %v1101_v51 = vmax.f32 %v1071_v8, 0.0  ;;  %v1195_v21 = vadd.f32 %v1173_v57, %v1169_v54  ;;  %v1296_v0 = vadd.f32 %v1284_v7, %v1280_v29  ;;  %v1306_v49 = vadd.f32 %v1285_v45, %v1281_v37 }
 0x281   :  { %v1056_v52 = vpop.f32.mrf.mxu1  ;;  %v1038_v36 = vadd.f32 %v1037_v58, %v2169_v2  ;;  %v1102_v3 = vmax.f32 %v1090_v35, 0.0 }
 0x282   :  { %v1057_v59 = vadd.f32 %v1056_v52, %v2169_v2  ;;  %v1170_v40 = vmul.f32 %v2171_v22, %v1101_v51  ;;  %v1282_v25 = vmul.f32 %v2177_v42, %v1101_v51 }
 0x283   :  { %v1107_v56 = vmax.f32 %v1038_v36, 0.0  ;;  %v1171_v61 = vmul.f32 %v2171_v22, %v1102_v3 }
 0x284   :  { %v1108_v47 = vmax.f32 %v1057_v59, 0.0 }
 0x285   :  { %v1072_v24 = vpop.f32.mrf.mxu2  ;;  %v2192_v18 = vpop.permute.xlu0 %1272  ;;  %v1176_v31 = vmul.f32 %v2173_v32, %v1107_v56 }
 0x286   :  { %v1091_v41 = vpop.f32.mrf.mxu3  ;;  %v1073_v55 = vadd.f32 %v1072_v24, %v983_v50  ;;  %v1177_v13 = vmul.f32 %v2173_v32, %v1108_v47  ;;  %v1288_v46 = vmul.f32 %v2192_v18, %v1107_v56  ;;  %v1289_v5 = vmul.f32 %v2192_v18, %v1108_v47 }
 0x287   :  { %v1092_v30 = vadd.f32 %v1091_v41, %v983_v50  ;;  %v1185_v34 = vadd.f32 %v1184_v19, %v1176_v31 }
 0x288   :  { %v1039_v10 = vpop.f32.mrf.mxu0  ;;  %v1105_v60 = vmax.f32 %v1073_v55, 0.0  ;;  %v1196_v44 = vadd.f32 %v1195_v21, %v1177_v13  ;;  %v1297_v12 = vadd.f32 %v1296_v0, %v1288_v46  ;;  %v1307_v58 = vadd.f32 %v1306_v49, %v1289_v5 }
 0x289   :  { %v1058_v38 = vpop.f32.mrf.mxu1  ;;  %v1040_v26 = vadd.f32 %v1039_v10, %v2147_v11  ;;  %v1106_v39 = vmax.f32 %v1092_v30, 0.0 }
 0x28a   :  { %v1059_v33 = vadd.f32 %v1058_v38, %v2147_v11  ;;  %v1174_v48 = vmul.f32 %v2155_v63, %v1105_v60  ;;  %v1286_v41 = vmul.f32 %v2183_v20, %v1105_v60 }
 0x28b   :  { %v1111_v23 = vmax.f32 %v1040_v26, 0.0  ;;  %v1175_v57 = vmul.f32 %v2155_v63, %v1106_v39  ;;  %v1287_v35 = vmul.f32 %v2183_v20, %v1106_v39 }
 0x28c   :  { %v1112_v1 = vmax.f32 %v1059_v33, 0.0  ;;  %v1205_v54 = vadd.f32 %v1174_v48, %v1170_v40  ;;  %v1316_v19 = vadd.f32 %v1286_v41, %v1282_v25 }
 0x28d   :  { %v2203_v27 = vpop.permute.xlu1 %1277  ;;  %v1075_v9 = vpop.f32.mrf.mxu2  ;;  %v1180_v4 = vmul.f32 %v2175_v62, %v1111_v23  ;;  %v1215_v20 = vadd.f32 %v1175_v57, %v1171_v61 }
 0x28e   :  { %v1094_v43 = vpop.f32.mrf.mxu3  ;;  %v1076_v50 = vadd.f32 %v1075_v9, %v2169_v2  ;;  %v1181_v15 = vmul.f32 %v2175_v62, %v1112_v1  ;;  %v1292_v16 = vmul.f32 %v2203_v27, %v1111_v23  ;;  %v1293_v17 = vmul.f32 %v2203_v27, %v1112_v1 }
 0x28f   :  { %v1095_v52 = vadd.f32 %v1094_v43, %v2169_v2  ;;  %v1187_v14 = vsel %vm1186_vm2, %v1180_v4, 0.0  ;;  %v1283_v2 = vmul.f32 %v2177_v42, %v1102_v3 }
 0x290   :  { %v1197_v53 = vsel %vm1186_vm2, %v1181_v15, 0.0  ;;  %v1298_v36 = vsel %vm1186_vm2, %v1292_v16, 0.0  ;;  %v1308_v59 = vsel %vm1186_vm2, %v1293_v17, 0.0  ;;  %v1188_v8 = vadd.f32 %v1187_v14, %v1185_v34 }
 0x291   :  { %v1198_v24 = vadd.f32 %v1197_v53, %v1196_v44  ;;  %v1109_v28 = vmax.f32 %v1076_v50, 0.0  ;;  %v1299_v56 = vadd.f32 %v1298_v36, %v1297_v12  ;;  %v1309_v47 = vadd.f32 %v1308_v59, %v1307_v58 }
 0x292   :  { %v1189_v7 = vrot.slane %v1188_v8, 4  ;;  %v1110_v55 = vmax.f32 %v1095_v52, 0.0  ;;  %v1326_v3 = vadd.f32 %v1287_v35, %v1283_v2 }
 0x293   :  { %v1199_v6 = vrot.slane %v1198_v24, 4  ;;  %v1310_v29 = vrot.slane %v1309_v47, 4  ;;  %v1300_v45 = vrot.slane %v1299_v56, 4  ;;  %v1178_v42 = vmul.f32 %v2173_v32, %v1109_v28 }
 0x294   :  { %v1290_v63 = vmul.f32 %v2192_v18, %v1109_v28  ;;  %v1179_v26 = vmul.f32 %v2173_v32, %v1110_v55  ;;  %v1291_v33 = vmul.f32 %v2192_v18, %v1110_v55  ;;  %v1190_v46 = vadd.f32 %v1189_v7, %v1188_v8 }
 0x295   :  { %v1077_v37 = vpop.f32.mrf.mxu2  ;;  %v1200_v51 = vadd.f32 %v1199_v6, %v1198_v24  ;;  %v1311_v31 = vadd.f32 %v1310_v29, %v1309_v47  ;;  %v1301_v5 = vadd.f32 %v1300_v45, %v1299_v56  ;;  %v1206_v40 = vadd.f32 %v1205_v54, %v1178_v42 }
 0x296   :  { %v1096_v22 = vpop.f32.mrf.mxu3  ;;  %v1078_v10 = vadd.f32 %v1077_v37, %v2147_v11  ;;  %v1317_v49 = vadd.f32 %v1316_v19, %v1290_v63  ;;  %v1216_v18 = vadd.f32 %v1215_v20, %v1179_v26  ;;  %v1327_v44 = vadd.f32 %v1326_v3, %v1291_v33 }
 0x297   :  { %v1097_v38 = vadd.f32 %v1096_v22, %v2147_v11  ;;  %v1201_v13 = vrot.slane %v1200_v51, 2  ;;  %v1312_v60 = vrot.slane %v1311_v31, 2  ;;  %v1191_v4 = vrot.slane %v1190_v46, 2 }
 0x298   :  { %v1113_v30 = vmax.f32 %v1078_v10, 0.0  ;;  %v1302_v15 = vrot.slane %v1301_v5, 2 }
 0x299   :  { %v1114_v21 = vmax.f32 %v1097_v38, 0.0  ;;  %v1202_v9 = vadd.f32 %v1201_v13, %v1200_v51  ;;  %v1313_v43 = vadd.f32 %v1312_v60, %v1311_v31  ;;  %v1192_v36 = vadd.f32 %v1191_v4, %v1190_v46  ;;  %v1345_v38 = vpop.permute.xlu2 %1344 }
 0x29a   :  { %v1182_v11 = vmul.f32 %v2175_v62, %v1113_v30  ;;  %v1294_v0 = vmul.f32 %v2203_v27, %v1113_v30  ;;  %v1303_v59 = vadd.f32 %v1302_v15, %v1301_v5 }
 0x29b   :  { %v1183_v23 = vmul.f32 %v2175_v62, %v1114_v21  ;;  %v1295_v1 = vmul.f32 %v2203_v27, %v1114_v21  ;;  %v1203_v12 = vrot.slane %v1202_v9, 1  ;;  %v1314_v27 = vrot.slane %v1313_v43, 1 }
 0x29c   :  { %v1207_v34 = vsel %vm1186_vm2, %v1182_v11, 0.0  ;;  %v1318_v32 = vsel %vm1186_vm2, %v1294_v0, 0.0  ;;  %v1193_v35 = vrot.slane %v1192_v36, 1  ;;  %v1304_v6 = vrot.slane %v1303_v59, 1 }
 0x29d   :  { %v1208_v39 = vadd.f32 %v1207_v34, %v1206_v40  ;;  %v1319_v50 = vadd.f32 %v1318_v32, %v1317_v49  ;;  %v1217_v16 = vsel %vm1186_vm2, %v1183_v23, 0.0  ;;  %v1328_v17 = vsel %vm1186_vm2, %v1295_v1, 0.0 }
 0x29e   :  { %v1218_v58 = vadd.f32 %v1217_v16, %v1216_v18  ;;  %v1329_v52 = vadd.f32 %v1328_v17, %v1327_v44  ;;  %v1204_v41 = vadd.f32 %v1203_v12, %v1202_v9  ;;  %v1315_v28 = vadd.f32 %v1314_v27, %v1313_v43 }
 0x29f   :  { %v1209_v48 = vrot.slane %v1208_v39, 4  ;;  %v1320_v62 = vrot.slane %v1319_v50, 4  ;;  %v1194_v19 = vadd.f32 %v1193_v35, %v1192_v36  ;;  %v1305_v42 = vadd.f32 %v1304_v6, %v1303_v59 }
 0x2a0   :  { %v1219_v25 = vrot.slane %v1218_v58, 4  ;;  %v1330_v61 = vrot.slane %v1329_v52, 4  ;;  %v1338_v51 = vsel %vm1336_vm3, %v1204_v41, %v1315_v28 }
 0x2a1   :  { %v1210_v14 = vadd.f32 %v1209_v48, %v1208_v39  ;;  %v1321_v53 = vadd.f32 %v1320_v62, %v1319_v50  ;;  %v1348_v13 = vadd.f32 %v1345_v38, %v1338_v51  ;;  %v1337_v26 = vsel %vm1336_vm3, %v1194_v19, %v1305_v42 }
 0x2a2   :  { %v1220_v56 = vadd.f32 %v1219_v25, %v1218_v58  ;;  %v1331_v47 = vadd.f32 %v1330_v61, %v1329_v52  ;;  %v1347_v11 = vadd.f32 %v1345_v38, %v1337_v26 }
 0x2a3   :  { %v1211_v8 = vrot.slane %v1210_v14, 2  ;;  %v1322_v24 = vrot.slane %v1321_v53, 2  ;;  %v1355_v46 = vrot.slane %v1348_v13, 6 }
 0x2a4   :  { %v1221_v54 = vrot.slane %v1220_v56, 2  ;;  %v1332_v7 = vrot.slane %v1331_v47, 2 }
 0x2a5   :  { %v1212_v2 = vadd.f32 %v1211_v8, %v1210_v14  ;;  %v1323_v57 = vadd.f32 %v1322_v24, %v1321_v53  ;;  %v1358_v40 = vsel %vm702_vm0, %v1347_v11, %v1355_v46 }
 0x2a6   :  { %v1222_v37 = vadd.f32 %v1221_v54, %v1220_v56  ;;  %v1333_v22 = vadd.f32 %v1332_v7, %v1331_v47 }
 0x2a7   :  { %v1213_v55 = vrot.slane %v1212_v2, 1  ;;  %v1324_v29 = vrot.slane %v1323_v57, 1 }
 0x2a8   :  { %v1223_v63 = vrot.slane %v1222_v37, 1  ;;  %v1334_v31 = vrot.slane %v1333_v22, 1 }
 0x2a9   :  { %v1214_v45 = vadd.f32 %v1213_v55, %v1212_v2  ;;  %v1325_v10 = vadd.f32 %v1324_v29, %v1323_v57 }
 0x2aa   :  { %v1224_v30 = vadd.f32 %v1223_v63, %v1222_v37  ;;  %v1335_v21 = vadd.f32 %v1334_v31, %v1333_v22 }
 0x2ab   :  { %v1339_v20 = vsel %vm1336_vm3, %v1214_v45, %v1325_v10 }
 0x2ac   :  { %v1349_v3 = vadd.f32 %v1345_v38, %v1339_v20  ;;  %v1340_v33 = vsel %vm1336_vm3, %v1224_v30, %v1335_v21 }
 0x2ad   :  { %v1350_v60 = vadd.f32 %v1345_v38, %v1340_v33 }
 0x2ae   :  { %v1356_v5 = vrot.slane %v1349_v3, 4 }
 0x2af   :  { %v1357_v0 = vrot.slane %v1350_v60, 2 }
 0x2b1   :  { %v1360_v49 = vsel %vm1359_vm4, %v1356_v5, %v1357_v0 }
 0x2b2   :  { %v1362_v23 = vsel %vm1361_vm5, %v1358_v40, %v1360_v49 }
 0x2b3   :  { %1364 = vst [vmem:[#allocation2] sm:$0xff] %v1362_v23 }
 0x2b4   :  { %1375 = dma.vmem_to_hbm [thread:$0]  %s1371_s24, 128, %s1373_s26, [#allocation3]  }
 0x2b5   :  { %1507 = dma.done.wait [#allocation3], 128  }
 0x2b6   :  { %1508 = vsyncadd [#allocation3], 4294967168 }
 0x2b7   :  { %1380 = vsyncpa [#allocation3], 1 }

</bundles_post_ra>
